<compile_context>
chip_gen: v7x
topology: tpu7x:2x2x1
jax: 0.10.0
libtpu: 0.0.40
codegen_flags: <defaults>
</compile_context>

<pallas_src>
import math
import numpy as np
import jax
import jax.numpy as jnp
from jax import lax
from jax.experimental import pallas as pl
from jax.experimental.pallas import tpu as pltpu

# ----------------------------- configuration -------------------------------
FEATURE = 8
BLOCK_FEATURE = 2
HIDDEN_FEATURE = 32
NUM_KNOT = 4
NUM_SPLINE = NUM_KNOT + 1
EPSILON = 1e-3
BATCH = 1024          # batch rides the lane axis inside the kernel
LANE_CHUNK = 256      # in-kernel working width (2 vregs); multiple of 128


def _softplus(v):
    # numerically-stable softplus, same formula in kernel and reference
    return jnp.maximum(v, 0.0) + jnp.log1p(jnp.exp(-jnp.abs(v)))


# ------------------------------ Pallas kernel ------------------------------
# Transposed ("batch-on-lanes") layout:
#   x_ref     : (F, tb)
#   w1t_ref   : (H, F)    = W1^T  (BlockMADE mask folded in)
#   b1t_ref   : (H, 1)
#   w2t_ref   : (OT, H)   = W2^T, rows pre-permuted to knot-major slabs
#   b2t_ref   : (OT, 1)
#   ybias_ref : (F, 1)
#   outputs   : (F, tb)
def make_bpwl_kernel(tb, chunk):
    F, K, S = FEATURE, NUM_KNOT, NUM_SPLINE
    n_chunks = tb // chunk

    def bpwl_kernel(x_ref, w1t_ref, b1t_ref, w2t_ref, b2t_ref, ybias_ref,
                    out_ref, slope_out_ref):
        # weights / biases are tiny and grid-invariant; load once per step
        w1t = w1t_ref[...]
        b1t = b1t_ref[...]
        w2t = w2t_ref[...]
        b2t = b2t_ref[...]
        ybias = ybias_ref[...]                                # (F, 1), lane-broadcast

        def chunk_body(c):
            if isinstance(c, int):
                off = c * chunk
            else:
                off = pl.multiple_of(c * chunk, chunk)
            x = x_ref[:, pl.ds(off, chunk)]                   # (F, chunk)

            # ---- BlockMADE (masked 2-layer MLP); masks folded into weights ----
            h = jnp.dot(w1t, x, preferred_element_type=jnp.float32) + b1t
            h = jnp.maximum(h, 0.0)                           # (H, chunk) ReLU
            made = jnp.dot(w2t, h, preferred_element_type=jnp.float32) + b2t
            # made (OT, chunk): [knot0|...|knot(K-1)|spline0|...|spline(S-1)],
            # F sublanes each (sublane-aligned slabs, free slices).

            xpos = [made[k * F:(k + 1) * F, :] for k in range(K)]
            slope = [made[K * F + s * F: K * F + (s + 1) * F, :] for s in range(S)]

            # ---- sort knot positions: optimal 5-comparator network for K=4 ----
            xs = list(xpos)

            def cswap(i, j):
                lo = jnp.minimum(xs[i], xs[j])
                hi = jnp.maximum(xs[i], xs[j])
                xs[i], xs[j] = lo, hi

            cswap(0, 1); cswap(2, 3); cswap(0, 2); cswap(1, 3); cswap(1, 2)

            # softplus only on the slabs needed by the cumsum (indices 1..K-1)
            slope_mid = [_softplus(slope[k]) + EPSILON for k in range(1, K)]

            # monotone nested masks (xs sorted ascending)
            m = [x >= xs[k] for k in range(K)]

            # ---- slope_selected = softplus(slope[idx]) + eps, idx = #{k: m_k} ----
            # TODO(synk): torchutils.searchsorted source not provided; assumed
            #             idx = #{k : input >= sorted_knot[k]}  in [0, num_knot].
            raw_sel = slope[0]
            for k in range(K):
                raw_sel = jnp.where(m[k], slope[k + 1], raw_sel)
            slope_sel = _softplus(raw_sel) + EPSILON

            # ---- fused cumsum + x/y selection (x_idx = max(idx-1, 0)) ----
            x_sel = xs[0]
            y_run = xs[0] + ybias
            y_sel = y_run
            for k in range(1, K):
                y_run = y_run + (xs[k] - xs[k - 1]) * slope_mid[k - 1]
                x_sel = jnp.where(m[k], xs[k], x_sel)
                y_sel = jnp.where(m[k], y_run, y_sel)

            out_ref[:, pl.ds(off, chunk)] = y_sel + (x - x_sel) * slope_sel
            slope_out_ref[:, pl.ds(off, chunk)] = slope_sel

        if n_chunks == 1:
            chunk_body(0)
        else:
            def body(c, carry):
                chunk_body(c)
                return carry
            lax.fori_loop(0, n_chunks, body, 0, unroll=True)

    return bpwl_kernel


# --------------------------------- wrapper ----------------------------------
def block_piecewise_linear(x_fb, w1t, b1t, w2t, b2t, y_bias):
    """x_fb: (F, B) feature-major layout kept end-to-end (batch on lanes).
    Returns (outputs, slope_selected), each (F, B)."""
    F, B = x_fb.shape
    H = w1t.shape[0]
    OT = w2t.shape[0]

    # Two parallel grid steps when the batch allows it (feeds both v7x TCs);
    # otherwise a single step. Lane width inside the kernel is LANE_CHUNK.
    if B >= 2 * LANE_CHUNK and (B // 2) % 128 == 0:
        tb = B // 2
    elif B % 128 == 0:
        tb = B
    else:
        tb = B
    chunk = LANE_CHUNK if (tb % LANE_CHUNK == 0) else tb
    grid = (B // tb,)

    flops = 2 * B * (F * H + H * OT) + 50 * B * F              # matmuls + elementwise
    transcendentals = 2 * B * F * NUM_KNOT                     # 4 softplus slabs (exp+log1p)
    bytes_accessed = 4 * (3 * B * F + F * H + H + H * OT + OT + F)

    kernel = make_bpwl_kernel(tb, chunk)
    out_fb, slope_fb = pl.pallas_call(
        kernel,
        grid=grid,
        in_specs=[
            pl.BlockSpec((F, tb), lambda i: (0, i)),
            pl.BlockSpec((H, F), lambda i: (0, 0)),
            pl.BlockSpec((H, 1), lambda i: (0, 0)),
            pl.BlockSpec((OT, H), lambda i: (0, 0)),
            pl.BlockSpec((OT, 1), lambda i: (0, 0)),
            pl.BlockSpec((F, 1), lambda i: (0, 0)),
        ],
        out_specs=[
            pl.BlockSpec((F, tb), lambda i: (0, i)),
            pl.BlockSpec((F, tb), lambda i: (0, i)),
        ],
        out_shape=[
            jax.ShapeDtypeStruct((F, B), jnp.float32),
            jax.ShapeDtypeStruct((F, B), jnp.float32),
        ],
        compiler_params=pltpu.CompilerParams(
            dimension_semantics=("parallel",)),
        cost_estimate=pl.CostEstimate(
            flops=flops, transcendentals=transcendentals,
            bytes_accessed=bytes_accessed),
    )(x_fb, w1t, b1t, w2t, b2t, y_bias)

    return out_fb, slope_fb


# --------------------------- plain-JAX reference ---------------------------
def reference(x, w1m, b1, w2m, b2, y_bias):
    """x: (B, F) user layout; mirrors the PyTorch forward exactly."""
    F, K, S = FEATURE, NUM_KNOT, NUM_SPLINE
    B = x.shape[0]
    h = jnp.maximum(x @ w1m + b1, 0.0)
    made = h @ w2m + b2                                       # feature-major layout
    x_pos = made[:, :F * K].reshape(B, F, K)
    slope = made[:, F * K:].reshape(B, F, S)
    slope_c = _softplus(slope) + EPSILON
    xs = jnp.sort(x_pos, axis=-1)
    delta_x = jnp.roll(xs, -1, axis=-1) - xs
    delta_y = delta_x * slope_c[..., 1:]
    tmp = jnp.concatenate([xs[..., :1] + y_bias[None, :, :], delta_y[..., :-1]], axis=-1)
    y_pos = jnp.cumsum(tmp, axis=-1)
    idx = jnp.sum((x[..., None] >= xs).astype(jnp.int32), axis=-1)
    x_idx = jnp.maximum(idx - 1, 0)
    slope_sel = jnp.take_along_axis(slope_c, idx[..., None], axis=-1)[..., 0]
    x_sel = jnp.take_along_axis(xs, x_idx[..., None], axis=-1)[..., 0]
    y_sel = jnp.take_along_axis(y_pos, x_idx[..., None], axis=-1)[..., 0]
    return y_sel + (x - x_sel) * slope_sel, slope_sel


# ------------------------- deterministic parameters ------------------------
def build_params():
    F, Bf, H, K, S = FEATURE, BLOCK_FEATURE, HIDDEN_FEATURE, NUM_KNOT, NUM_SPLINE
    num_block = math.ceil(F / Bf)
    OT = F * K + F * S

    key = jax.random.PRNGKey(0)
    k_x, k_w1, k_b1, k_w2, k_b2, k_yb = jax.random.split(key, 6)

    W1 = 0.3 * jax.random.normal(k_w1, (F, H), dtype=jnp.float32)
    b1 = 0.1 * jax.random.normal(k_b1, (1, H), dtype=jnp.float32)
    W2 = 0.3 * jax.random.normal(k_w2, (H, OT), dtype=jnp.float32)
    b2 = 0.1 * jax.random.normal(k_b2, (1, OT), dtype=jnp.float32)
    # Module initialises y_bias to zeros; use a nonzero value here so the
    # per-feature (sublane) broadcast orientation is actually exercised.
    y_bias = 0.1 * jax.random.normal(k_yb, (F, 1), dtype=jnp.float32)

    # --- BlockMADE autoregressive masks ---
    # TODO(synk): bmade.BlockMADE source not provided; standard block-
    #             autoregressive degree assignment assumed.
    in_block = np.arange(F) // Bf                              # input block id
    h_block = (np.arange(H) * num_block) // H                  # hidden block id
    mask1 = (h_block[None, :] >= in_block[:, None]).astype(np.float32)     # (F, H)
    out_block = np.concatenate([np.arange(F * K) // (Bf * K),
                                np.arange(F * S) // (Bf * S)])
    mask2 = (out_block[None, :] > h_block[:, None]).astype(np.float32)     # (H, OT)

    W1m = W1 * jnp.asarray(mask1)                              # (F, H)
    W2m = W2 * jnp.asarray(mask2)                              # (H, OT) feature-major

    # --- permutation: feature-major -> knot-major slabs (kernel layout) ---
    perm = np.zeros(OT, dtype=np.int32)
    for k in range(K):
        for f in range(F):
            perm[k * F + f] = f * K + k
    for s in range(S):
        for f in range(F):
            perm[F * K + s * F + f] = F * K + f * S + s

    # kernel-layout (transposed, knot-major) parameters, built once (tiny)
    w1t = jnp.asarray(W1m.T)                                   # (H, F)
    b1t = jnp.asarray(b1.reshape(H, 1))                        # (H, 1)
    w2t = jnp.asarray(W2m[:, perm].T)                          # (OT, H)
    b2t = jnp.asarray(b2[:, perm].reshape(OT, 1))              # (OT, 1)

    # input kept in (F, B) "batch-on-lanes" layout end-to-end
    x_fb = jax.random.normal(k_x, (F, BATCH), dtype=jnp.float32)

    return x_fb, (w1t, b1t, w2t, b2t, y_bias), (W1m, b1, W2m, b2, y_bias)


# ----------------------------------- main -----------------------------------
if __name__ == "__main__":
    x_fb, krn_params, ref_params = build_params()
    w1t, b1t, w2t, b2t, y_bias = krn_params
    W1m, b1, W2m, b2, _ = ref_params

    out_fb, slope_fb = block_piecewise_linear(x_fb, w1t, b1t, w2t, b2t, y_bias)
    out_fb = jax.block_until_ready(out_fb)
    slope_fb = jax.block_until_ready(slope_fb)

    # correctness check against the plain-JAX reference (user (B,F) layout)
    ref_out, ref_slope = reference(x_fb.T, W1m, b1, W2m, b2, y_bias)
    np.testing.assert_allclose(np.asarray(out_fb), np.asarray(ref_out).T,
                               rtol=1e-4, atol=1e-4)
    np.testing.assert_allclose(np.asarray(slope_fb), np.asarray(ref_slope).T,
                               rtol=1e-4, atol=1e-4)

    print("KERNEL_OK")
</pallas_src>

<mosaic_0001>
module attributes {stable_mosaic.version = 11 : i64} {
  func.func @bpwl_kernel(%arg0: i32, %arg1: memref<8x512xf32, #tpu.memory_space<vmem>>, %arg2: memref<32x8xf32, #tpu.memory_space<vmem>>, %arg3: memref<32x1xf32, #tpu.memory_space<vmem>>, %arg4: memref<72x32xf32, #tpu.memory_space<vmem>>, %arg5: memref<72x1xf32, #tpu.memory_space<vmem>>, %arg6: memref<8x1xf32, #tpu.memory_space<vmem>>, %arg7: memref<8x512xf32, #tpu.memory_space<vmem>>, %arg8: memref<8x512xf32, #tpu.memory_space<vmem>>) attributes {dimension_semantics = [#tpu.dimension_semantics<parallel>], iteration_bounds = array<i64: 2>, scalar_prefetch = 0 : i64, scratch_operands = 0 : i64, tpu.core_type = #tpu.core_type<tc>, window_params = [{transform_indices = @transform_0, window_bounds = array<i64: 8, 512>}, {pipeline_mode = #tpu.pipeline_mode<synchronous>, transform_indices = @transform_1, window_bounds = array<i64: 32, 8>}, {pipeline_mode = #tpu.pipeline_mode<synchronous>, transform_indices = @transform_2, window_bounds = array<i64: 32, 1>}, {pipeline_mode = #tpu.pipeline_mode<synchronous>, transform_indices = @transform_3, window_bounds = array<i64: 72, 32>}, {pipeline_mode = #tpu.pipeline_mode<synchronous>, transform_indices = @transform_4, window_bounds = array<i64: 72, 1>}, {pipeline_mode = #tpu.pipeline_mode<synchronous>, transform_indices = @transform_5, window_bounds = array<i64: 8, 1>}, {transform_indices = @transform_6, window_bounds = array<i64: 8, 512>}, {transform_indices = @transform_7, window_bounds = array<i64: 8, 512>}]} {
    %c0 = arith.constant 0 : index
    %c0_0 = arith.constant 0 : index
    %0 = vector.load %arg2[%c0, %c0_0] : memref<32x8xf32, #tpu.memory_space<vmem>>, vector<32x8xf32>
    %c0_1 = arith.constant 0 : index
    %c0_2 = arith.constant 0 : index
    %1 = vector.load %arg3[%c0_1, %c0_2] : memref<32x1xf32, #tpu.memory_space<vmem>>, vector<32x1xf32>
    %c0_3 = arith.constant 0 : index
    %c0_4 = arith.constant 0 : index
    %2 = vector.load %arg4[%c0_3, %c0_4] : memref<72x32xf32, #tpu.memory_space<vmem>>, vector<72x32xf32>
    %c0_5 = arith.constant 0 : index
    %c0_6 = arith.constant 0 : index
    %3 = vector.load %arg5[%c0_5, %c0_6] : memref<72x1xf32, #tpu.memory_space<vmem>>, vector<72x1xf32>
    %c0_7 = arith.constant 0 : index
    %c0_8 = arith.constant 0 : index
    %4 = vector.load %arg6[%c0_7, %c0_8] : memref<8x1xf32, #tpu.memory_space<vmem>>, vector<8x1xf32>
    %c0_i32 = arith.constant 0 : i32
    %c256_i32 = arith.constant 256 : i32
    %5 = arith.muli %c0_i32, %c256_i32 : i32
    %6 = tpu.assume_multiple %5, 256 : i32
    %c0_9 = arith.constant 0 : index
    %7 = arith.index_cast %6 : i32 to index
    %8 = vector.load %arg1[%c0_9, %7] : memref<8x512xf32, #tpu.memory_space<vmem>>, vector<8x256xf32>
    %cst = arith.constant dense<0.000000e+00> : vector<32x256xf32>
    %9 = tpu.matmul %0, %8, %cst {dimension_numbers = #tpu.dot_dimension_numbers<[1], [0], [0], [1], [0, 0, 1, 1], [], []>} : vector<32x8xf32>, vector<8x256xf32>, vector<32x256xf32> -> vector<32x256xf32>
    %10 = vector.broadcast %1 : vector<32x1xf32> to vector<32x256xf32>
    %11 = arith.addf %9, %10 : vector<32x256xf32>
    %cst_10 = arith.constant 0.000000e+00 : f32
    %12 = vector.broadcast %cst_10 : f32 to vector<32x256xf32>
    %13 = arith.maximumf %11, %12 : vector<32x256xf32>
    %cst_11 = arith.constant dense<0.000000e+00> : vector<72x256xf32>
    %14 = tpu.matmul %2, %13, %cst_11 {dimension_numbers = #tpu.dot_dimension_numbers<[1], [0], [0], [1], [0, 0, 1, 1], [], []>} : vector<72x32xf32>, vector<32x256xf32>, vector<72x256xf32> -> vector<72x256xf32>
    %15 = vector.broadcast %3 : vector<72x1xf32> to vector<72x256xf32>
    %16 = arith.addf %14, %15 : vector<72x256xf32>
    %17 = vector.extract_strided_slice %16 {offsets = [0, 0], sizes = [8, 256], strides = [1, 1]} : vector<72x256xf32> to vector<8x256xf32>
    %18 = vector.extract_strided_slice %16 {offsets = [8, 0], sizes = [8, 256], strides = [1, 1]} : vector<72x256xf32> to vector<8x256xf32>
    %19 = vector.extract_strided_slice %16 {offsets = [16, 0], sizes = [8, 256], strides = [1, 1]} : vector<72x256xf32> to vector<8x256xf32>
    %20 = vector.extract_strided_slice %16 {offsets = [24, 0], sizes = [8, 256], strides = [1, 1]} : vector<72x256xf32> to vector<8x256xf32>
    %21 = vector.extract_strided_slice %16 {offsets = [32, 0], sizes = [8, 256], strides = [1, 1]} : vector<72x256xf32> to vector<8x256xf32>
    %22 = vector.extract_strided_slice %16 {offsets = [40, 0], sizes = [8, 256], strides = [1, 1]} : vector<72x256xf32> to vector<8x256xf32>
    %23 = vector.extract_strided_slice %16 {offsets = [48, 0], sizes = [8, 256], strides = [1, 1]} : vector<72x256xf32> to vector<8x256xf32>
    %24 = vector.extract_strided_slice %16 {offsets = [56, 0], sizes = [8, 256], strides = [1, 1]} : vector<72x256xf32> to vector<8x256xf32>
    %25 = vector.extract_strided_slice %16 {offsets = [64, 0], sizes = [8, 256], strides = [1, 1]} : vector<72x256xf32> to vector<8x256xf32>
    %26 = arith.minimumf %17, %18 : vector<8x256xf32>
    %27 = arith.maximumf %17, %18 : vector<8x256xf32>
    %28 = arith.minimumf %19, %20 : vector<8x256xf32>
    %29 = arith.maximumf %19, %20 : vector<8x256xf32>
    %30 = arith.minimumf %26, %28 : vector<8x256xf32>
    %31 = arith.maximumf %26, %28 : vector<8x256xf32>
    %32 = arith.minimumf %27, %29 : vector<8x256xf32>
    %33 = arith.maximumf %27, %29 : vector<8x256xf32>
    %34 = arith.minimumf %32, %31 : vector<8x256xf32>
    %35 = arith.maximumf %32, %31 : vector<8x256xf32>
    %cst_12 = arith.constant 0.000000e+00 : f32
    %36 = vector.broadcast %cst_12 : f32 to vector<8x256xf32>
    %37 = arith.maximumf %22, %36 : vector<8x256xf32>
    %38 = math.absf %22 : vector<8x256xf32>
    %cst_13 = arith.constant 0.000000e+00 : f32
    %39 = vector.broadcast %cst_13 : f32 to vector<8x256xf32>
    %40 = arith.subf %39, %38 : vector<8x256xf32>
    %41 = math.exp %40 : vector<8x256xf32>
    %42 = math.log1p %41 : vector<8x256xf32>
    %43 = arith.addf %37, %42 : vector<8x256xf32>
    %cst_14 = arith.constant 1.000000e-03 : f32
    %44 = vector.broadcast %cst_14 : f32 to vector<8x256xf32>
    %45 = arith.addf %43, %44 : vector<8x256xf32>
    %cst_15 = arith.constant 0.000000e+00 : f32
    %46 = vector.broadcast %cst_15 : f32 to vector<8x256xf32>
    %47 = arith.maximumf %23, %46 : vector<8x256xf32>
    %48 = math.absf %23 : vector<8x256xf32>
    %cst_16 = arith.constant 0.000000e+00 : f32
    %49 = vector.broadcast %cst_16 : f32 to vector<8x256xf32>
    %50 = arith.subf %49, %48 : vector<8x256xf32>
    %51 = math.exp %50 : vector<8x256xf32>
    %52 = math.log1p %51 : vector<8x256xf32>
    %53 = arith.addf %47, %52 : vector<8x256xf32>
    %cst_17 = arith.constant 1.000000e-03 : f32
    %54 = vector.broadcast %cst_17 : f32 to vector<8x256xf32>
    %55 = arith.addf %53, %54 : vector<8x256xf32>
    %cst_18 = arith.constant 0.000000e+00 : f32
    %56 = vector.broadcast %cst_18 : f32 to vector<8x256xf32>
    %57 = arith.maximumf %24, %56 : vector<8x256xf32>
    %58 = math.absf %24 : vector<8x256xf32>
    %cst_19 = arith.constant 0.000000e+00 : f32
    %59 = vector.broadcast %cst_19 : f32 to vector<8x256xf32>
    %60 = arith.subf %59, %58 : vector<8x256xf32>
    %61 = math.exp %60 : vector<8x256xf32>
    %62 = math.log1p %61 : vector<8x256xf32>
    %63 = arith.addf %57, %62 : vector<8x256xf32>
    %cst_20 = arith.constant 1.000000e-03 : f32
    %64 = vector.broadcast %cst_20 : f32 to vector<8x256xf32>
    %65 = arith.addf %63, %64 : vector<8x256xf32>
    %66 = arith.cmpf oge, %8, %30 : vector<8x256xf32>
    %67 = arith.cmpf oge, %8, %34 : vector<8x256xf32>
    %68 = arith.cmpf oge, %8, %35 : vector<8x256xf32>
    %69 = arith.cmpf oge, %8, %33 : vector<8x256xf32>
    %70 = arith.select %66, %22, %21 : vector<8x256xi1>, vector<8x256xf32>
    %71 = arith.select %67, %23, %70 : vector<8x256xi1>, vector<8x256xf32>
    %72 = arith.select %68, %24, %71 : vector<8x256xi1>, vector<8x256xf32>
    %73 = arith.select %69, %25, %72 : vector<8x256xi1>, vector<8x256xf32>
    %cst_21 = arith.constant 0.000000e+00 : f32
    %74 = vector.broadcast %cst_21 : f32 to vector<8x256xf32>
    %75 = arith.maximumf %73, %74 : vector<8x256xf32>
    %76 = math.absf %73 : vector<8x256xf32>
    %cst_22 = arith.constant 0.000000e+00 : f32
    %77 = vector.broadcast %cst_22 : f32 to vector<8x256xf32>
    %78 = arith.subf %77, %76 : vector<8x256xf32>
    %79 = math.exp %78 : vector<8x256xf32>
    %80 = math.log1p %79 : vector<8x256xf32>
    %81 = arith.addf %75, %80 : vector<8x256xf32>
    %cst_23 = arith.constant 1.000000e-03 : f32
    %82 = vector.broadcast %cst_23 : f32 to vector<8x256xf32>
    %83 = arith.addf %81, %82 : vector<8x256xf32>
    %84 = vector.broadcast %4 : vector<8x1xf32> to vector<8x256xf32>
    %85 = arith.addf %30, %84 : vector<8x256xf32>
    %86 = arith.subf %34, %30 : vector<8x256xf32>
    %87 = arith.mulf %86, %45 : vector<8x256xf32>
    %88 = arith.addf %85, %87 : vector<8x256xf32>
    %89 = arith.select %67, %34, %30 : vector<8x256xi1>, vector<8x256xf32>
    %90 = arith.select %67, %88, %85 : vector<8x256xi1>, vector<8x256xf32>
    %91 = arith.subf %35, %34 : vector<8x256xf32>
    %92 = arith.mulf %91, %55 : vector<8x256xf32>
    %93 = arith.addf %88, %92 : vector<8x256xf32>
    %94 = arith.select %68, %35, %89 : vector<8x256xi1>, vector<8x256xf32>
    %95 = arith.select %68, %93, %90 : vector<8x256xi1>, vector<8x256xf32>
    %96 = arith.subf %33, %35 : vector<8x256xf32>
    %97 = arith.mulf %96, %65 : vector<8x256xf32>
    %98 = arith.addf %93, %97 : vector<8x256xf32>
    %99 = arith.select %69, %33, %94 : vector<8x256xi1>, vector<8x256xf32>
    %100 = arith.select %69, %98, %95 : vector<8x256xi1>, vector<8x256xf32>
    %101 = arith.subf %8, %99 : vector<8x256xf32>
    %102 = arith.mulf %101, %83 : vector<8x256xf32>
    %103 = arith.addf %100, %102 : vector<8x256xf32>
    %c0_24 = arith.constant 0 : index
    %104 = arith.index_cast %6 : i32 to index
    %105 = vector.load %arg7[%c0_24, %104] : memref<8x512xf32, #tpu.memory_space<vmem>>, vector<8x256xf32>
    tpu.vector_store %arg7[%c0_24, %104], %103 {strides = array<i32>} : memref<8x512xf32, #tpu.memory_space<vmem>>, vector<8x256xf32>,
    %c0_25 = arith.constant 0 : index
    %106 = arith.index_cast %6 : i32 to index
    %107 = vector.load %arg8[%c0_25, %106] : memref<8x512xf32, #tpu.memory_space<vmem>>, vector<8x256xf32>
    tpu.vector_store %arg8[%c0_25, %106], %83 {strides = array<i32>} : memref<8x512xf32, #tpu.memory_space<vmem>>, vector<8x256xf32>,
    %c1_i32 = arith.constant 1 : i32
    %c256_i32_26 = arith.constant 256 : i32
    %108 = arith.muli %c1_i32, %c256_i32_26 : i32
    %109 = tpu.assume_multiple %108, 256 : i32
    %c0_27 = arith.constant 0 : index
    %110 = arith.index_cast %109 : i32 to index
    %111 = vector.load %arg1[%c0_27, %110] : memref<8x512xf32, #tpu.memory_space<vmem>>, vector<8x256xf32>
    %cst_28 = arith.constant dense<0.000000e+00> : vector<32x256xf32>
    %112 = tpu.matmul %0, %111, %cst_28 {dimension_numbers = #tpu.dot_dimension_numbers<[1], [0], [0], [1], [0, 0, 1, 1], [], []>} : vector<32x8xf32>, vector<8x256xf32>, vector<32x256xf32> -> vector<32x256xf32>
    %113 = vector.broadcast %1 : vector<32x1xf32> to vector<32x256xf32>
    %114 = arith.addf %112, %113 : vector<32x256xf32>
    %cst_29 = arith.constant 0.000000e+00 : f32
    %115 = vector.broadcast %cst_29 : f32 to vector<32x256xf32>
    %116 = arith.maximumf %114, %115 : vector<32x256xf32>
    %cst_30 = arith.constant dense<0.000000e+00> : vector<72x256xf32>
    %117 = tpu.matmul %2, %116, %cst_30 {dimension_numbers = #tpu.dot_dimension_numbers<[1], [0], [0], [1], [0, 0, 1, 1], [], []>} : vector<72x32xf32>, vector<32x256xf32>, vector<72x256xf32> -> vector<72x256xf32>
    %118 = vector.broadcast %3 : vector<72x1xf32> to vector<72x256xf32>
    %119 = arith.addf %117, %118 : vector<72x256xf32>
    %120 = vector.extract_strided_slice %119 {offsets = [0, 0], sizes = [8, 256], strides = [1, 1]} : vector<72x256xf32> to vector<8x256xf32>
    %121 = vector.extract_strided_slice %119 {offsets = [8, 0], sizes = [8, 256], strides = [1, 1]} : vector<72x256xf32> to vector<8x256xf32>
    %122 = vector.extract_strided_slice %119 {offsets = [16, 0], sizes = [8, 256], strides = [1, 1]} : vector<72x256xf32> to vector<8x256xf32>
    %123 = vector.extract_strided_slice %119 {offsets = [24, 0], sizes = [8, 256], strides = [1, 1]} : vector<72x256xf32> to vector<8x256xf32>
    %124 = vector.extract_strided_slice %119 {offsets = [32, 0], sizes = [8, 256], strides = [1, 1]} : vector<72x256xf32> to vector<8x256xf32>
    %125 = vector.extract_strided_slice %119 {offsets = [40, 0], sizes = [8, 256], strides = [1, 1]} : vector<72x256xf32> to vector<8x256xf32>
    %126 = vector.extract_strided_slice %119 {offsets = [48, 0], sizes = [8, 256], strides = [1, 1]} : vector<72x256xf32> to vector<8x256xf32>
    %127 = vector.extract_strided_slice %119 {offsets = [56, 0], sizes = [8, 256], strides = [1, 1]} : vector<72x256xf32> to vector<8x256xf32>
    %128 = vector.extract_strided_slice %119 {offsets = [64, 0], sizes = [8, 256], strides = [1, 1]} : vector<72x256xf32> to vector<8x256xf32>
    %129 = arith.minimumf %120, %121 : vector<8x256xf32>
    %130 = arith.maximumf %120, %121 : vector<8x256xf32>
    %131 = arith.minimumf %122, %123 : vector<8x256xf32>
    %132 = arith.maximumf %122, %123 : vector<8x256xf32>
    %133 = arith.minimumf %129, %131 : vector<8x256xf32>
    %134 = arith.maximumf %129, %131 : vector<8x256xf32>
    %135 = arith.minimumf %130, %132 : vector<8x256xf32>
    %136 = arith.maximumf %130, %132 : vector<8x256xf32>
    %137 = arith.minimumf %135, %134 : vector<8x256xf32>
    %138 = arith.maximumf %135, %134 : vector<8x256xf32>
    %cst_31 = arith.constant 0.000000e+00 : f32
    %139 = vector.broadcast %cst_31 : f32 to vector<8x256xf32>
    %140 = arith.maximumf %125, %139 : vector<8x256xf32>
    %141 = math.absf %125 : vector<8x256xf32>
    %cst_32 = arith.constant 0.000000e+00 : f32
    %142 = vector.broadcast %cst_32 : f32 to vector<8x256xf32>
    %143 = arith.subf %142, %141 : vector<8x256xf32>
    %144 = math.exp %143 : vector<8x256xf32>
    %145 = math.log1p %144 : vector<8x256xf32>
    %146 = arith.addf %140, %145 : vector<8x256xf32>
    %cst_33 = arith.constant 1.000000e-03 : f32
    %147 = vector.broadcast %cst_33 : f32 to vector<8x256xf32>
    %148 = arith.addf %146, %147 : vector<8x256xf32>
    %cst_34 = arith.constant 0.000000e+00 : f32
    %149 = vector.broadcast %cst_34 : f32 to vector<8x256xf32>
    %150 = arith.maximumf %126, %149 : vector<8x256xf32>
    %151 = math.absf %126 : vector<8x256xf32>
    %cst_35 = arith.constant 0.000000e+00 : f32
    %152 = vector.broadcast %cst_35 : f32 to vector<8x256xf32>
    %153 = arith.subf %152, %151 : vector<8x256xf32>
    %154 = math.exp %153 : vector<8x256xf32>
    %155 = math.log1p %154 : vector<8x256xf32>
    %156 = arith.addf %150, %155 : vector<8x256xf32>
    %cst_36 = arith.constant 1.000000e-03 : f32
    %157 = vector.broadcast %cst_36 : f32 to vector<8x256xf32>
    %158 = arith.addf %156, %157 : vector<8x256xf32>
    %cst_37 = arith.constant 0.000000e+00 : f32
    %159 = vector.broadcast %cst_37 : f32 to vector<8x256xf32>
    %160 = arith.maximumf %127, %159 : vector<8x256xf32>
    %161 = math.absf %127 : vector<8x256xf32>
    %cst_38 = arith.constant 0.000000e+00 : f32
    %162 = vector.broadcast %cst_38 : f32 to vector<8x256xf32>
    %163 = arith.subf %162, %161 : vector<8x256xf32>
    %164 = math.exp %163 : vector<8x256xf32>
    %165 = math.log1p %164 : vector<8x256xf32>
    %166 = arith.addf %160, %165 : vector<8x256xf32>
    %cst_39 = arith.constant 1.000000e-03 : f32
    %167 = vector.broadcast %cst_39 : f32 to vector<8x256xf32>
    %168 = arith.addf %166, %167 : vector<8x256xf32>
    %169 = arith.cmpf oge, %111, %133 : vector<8x256xf32>
    %170 = arith.cmpf oge, %111, %137 : vector<8x256xf32>
    %171 = arith.cmpf oge, %111, %138 : vector<8x256xf32>
    %172 = arith.cmpf oge, %111, %136 : vector<8x256xf32>
    %173 = arith.select %169, %125, %124 : vector<8x256xi1>, vector<8x256xf32>
    %174 = arith.select %170, %126, %173 : vector<8x256xi1>, vector<8x256xf32>
    %175 = arith.select %171, %127, %174 : vector<8x256xi1>, vector<8x256xf32>
    %176 = arith.select %172, %128, %175 : vector<8x256xi1>, vector<8x256xf32>
    %cst_40 = arith.constant 0.000000e+00 : f32
    %177 = vector.broadcast %cst_40 : f32 to vector<8x256xf32>
    %178 = arith.maximumf %176, %177 : vector<8x256xf32>
    %179 = math.absf %176 : vector<8x256xf32>
    %cst_41 = arith.constant 0.000000e+00 : f32
    %180 = vector.broadcast %cst_41 : f32 to vector<8x256xf32>
    %181 = arith.subf %180, %179 : vector<8x256xf32>
    %182 = math.exp %181 : vector<8x256xf32>
    %183 = math.log1p %182 : vector<8x256xf32>
    %184 = arith.addf %178, %183 : vector<8x256xf32>
    %cst_42 = arith.constant 1.000000e-03 : f32
    %185 = vector.broadcast %cst_42 : f32 to vector<8x256xf32>
    %186 = arith.addf %184, %185 : vector<8x256xf32>
    %187 = vector.broadcast %4 : vector<8x1xf32> to vector<8x256xf32>
    %188 = arith.addf %133, %187 : vector<8x256xf32>
    %189 = arith.subf %137, %133 : vector<8x256xf32>
    %190 = arith.mulf %189, %148 : vector<8x256xf32>
    %191 = arith.addf %188, %190 : vector<8x256xf32>
    %192 = arith.select %170, %137, %133 : vector<8x256xi1>, vector<8x256xf32>
    %193 = arith.select %170, %191, %188 : vector<8x256xi1>, vector<8x256xf32>
    %194 = arith.subf %138, %137 : vector<8x256xf32>
    %195 = arith.mulf %194, %158 : vector<8x256xf32>
    %196 = arith.addf %191, %195 : vector<8x256xf32>
    %197 = arith.select %171, %138, %192 : vector<8x256xi1>, vector<8x256xf32>
    %198 = arith.select %171, %196, %193 : vector<8x256xi1>, vector<8x256xf32>
    %199 = arith.subf %136, %138 : vector<8x256xf32>
    %200 = arith.mulf %199, %168 : vector<8x256xf32>
    %201 = arith.addf %196, %200 : vector<8x256xf32>
    %202 = arith.select %172, %136, %197 : vector<8x256xi1>, vector<8x256xf32>
    %203 = arith.select %172, %201, %198 : vector<8x256xi1>, vector<8x256xf32>
    %204 = arith.subf %111, %202 : vector<8x256xf32>
    %205 = arith.mulf %204, %186 : vector<8x256xf32>
    %206 = arith.addf %203, %205 : vector<8x256xf32>
    %c0_43 = arith.constant 0 : index
    %207 = arith.index_cast %109 : i32 to index
    %208 = vector.load %arg7[%c0_43, %207] : memref<8x512xf32, #tpu.memory_space<vmem>>, vector<8x256xf32>
    tpu.vector_store %arg7[%c0_43, %207], %206 {strides = array<i32>} : memref<8x512xf32, #tpu.memory_space<vmem>>, vector<8x256xf32>,
    %c0_44 = arith.constant 0 : index
    %209 = arith.index_cast %109 : i32 to index
    %210 = vector.load %arg8[%c0_44, %209] : memref<8x512xf32, #tpu.memory_space<vmem>>, vector<8x256xf32>
    tpu.vector_store %arg8[%c0_44, %209], %186 {strides = array<i32>} : memref<8x512xf32, #tpu.memory_space<vmem>>, vector<8x256xf32>,
    %c2_i32 = arith.constant 2 : i32
    return
  }
  func.func @transform_0(%arg0: i32) -> (i32, i32) {
    %c0_i32 = arith.constant 0 : i32
    %c0_i32_0 = arith.constant 0 : i32
    return %c0_i32, %arg0 : i32, i32
  }
  func.func @transform_1(%arg0: i32) -> (i32, i32) {
    %c0_i32 = arith.constant 0 : i32
    %c0_i32_0 = arith.constant 0 : i32
    %c0_i32_1 = arith.constant 0 : i32
    return %c0_i32, %c0_i32_0 : i32, i32
  }
  func.func @transform_2(%arg0: i32) -> (i32, i32) {
    %c0_i32 = arith.constant 0 : i32
    %c0_i32_0 = arith.constant 0 : i32
    %c0_i32_1 = arith.constant 0 : i32
    return %c0_i32, %c0_i32_0 : i32, i32
  }
  func.func @transform_3(%arg0: i32) -> (i32, i32) {
    %c0_i32 = arith.constant 0 : i32
    %c0_i32_0 = arith.constant 0 : i32
    %c0_i32_1 = arith.constant 0 : i32
    return %c0_i32, %c0_i32_0 : i32, i32
  }
  func.func @transform_4(%arg0: i32) -> (i32, i32) {
    %c0_i32 = arith.constant 0 : i32
    %c0_i32_0 = arith.constant 0 : i32
    %c0_i32_1 = arith.constant 0 : i32
    return %c0_i32, %c0_i32_0 : i32, i32
  }
  func.func @transform_5(%arg0: i32) -> (i32, i32) {
    %c0_i32 = arith.constant 0 : i32
    %c0_i32_0 = arith.constant 0 : i32
    %c0_i32_1 = arith.constant 0 : i32
    return %c0_i32, %c0_i32_0 : i32, i32
  }
  func.func @transform_6(%arg0: i32) -> (i32, i32) {
    %c0_i32 = arith.constant 0 : i32
    %c0_i32_0 = arith.constant 0 : i32
    return %c0_i32, %arg0 : i32, i32
  }
  func.func @transform_7(%arg0: i32) -> (i32, i32) {
    %c0_i32 = arith.constant 0 : i32
    %c0_i32_0 = arith.constant 0 : i32
    return %c0_i32, %arg0 : i32, i32
  }
}

</mosaic_0001>

<bundles_post_ra>
// kernel: tpu_custom_call.1
= control target key start
LH: loop header
LB: loop body
LE: loop exit
PB: predicated region body
PF: predicated region fallthrough
CT: control target
= control target key end

     0   :  { %13 = vsyncpa [#allocation3], 0  ;;  %s2588_s0 = inlined_call_operand.vmem [shape: f32[8,1024], index: 0, kind: input, shape index: {}]   ;;  %s2589_s1 = inlined_call_operand.vmem [shape: f32[32,8], index: 1, kind: input, shape index: {}]   ;;  %s2590_s2 = inlined_call_operand.vmem [shape: f32[32,1], index: 2, kind: input, shape index: {}]   ;;  %s2591_s3 = inlined_call_operand.vmem [shape: f32[72,32], index: 3, kind: input, shape index: {}]   ;;  %s2592_s4 = inlined_call_operand.vmem [shape: f32[72,1], index: 4, kind: input, shape index: {}]   ;;  %s2593_s5 = inlined_call_operand.vmem [shape: f32[8,1], index: 5, kind: input, shape index: {}]   ;;  %s2594_s6 = inlined_call_operand.hbm [shape: f32[8,1024], index: 6, kind: output, shape index: {0}]   ;;  %s2595_s7 = inlined_call_operand.hbm [shape: f32[8,1024], index: 7, kind: output, shape index: {1}]  }
   0x1   :  { %15 = vsyncpa [#allocation3 + $0x1], 0 }
   0x2   :  { %16 = vsyncpa [#allocation5], 0 }
   0x3   :  { %18 = vsyncpa [#allocation5 + $0x1], 0  ;;  %s1728_s24 = smov 0   ;;  %s1730_s25 = smov 0  }
   0x4   :  { %s1732_s26 = smov 0   ;;  %s1734_s27 = smov 0  }
   0x5 LB: > { %s1749_s28 = sadd.s32 4294967295, %s1682_s27   ;;  %s1406_s29 = sadd.s32 4294967294, %s1682_s27   ;;  %s1682_s27 = sphi %s1734_s27, %s2684_s27   ;;  %s1678_s26 = sphi %s1732_s26, %s2683_s26   ;;  %s1674_s25 = sphi %s1730_s25, %s2682_s25   ;;  %s1670_s24 = sphi %s1728_s24, %s2681_s24  }
   0x6   : > { %s1753_s30 = sadd.s32 1, %s1682_s27   ;;  %s162_s8 = sadd.s32 1, %s1678_s26 }
   0x7   : > { %s159_s9 = ssub.s32 %s1682_s27, %s1753_s30  ;;  %p172_p0 = scmp.ne.s32.totalorder %s1678_s26, %s1674_s25 }
   0x8   : > { %p160_p1 = scmp.eq.s32.totalorder %s159_s9, 0  ;;  %p173_p2 = scmp.eq.s32.totalorder %s1749_s28, 1 }
   0x9   : > { %p178_p3 = scmp.ne.s32.totalorder %s1674_s25, %s1670_s24  ;;  %p179_p4 = scmp.eq.s32.totalorder %s1406_s29, 1 }
   0xa   : > { %s1764_s10 = scalar_select %p160_p1, %s1678_s26, %s162_s8  }
   0xb   : > { %p1766_p5 = por %p173_p2, %p172_p0  ;;  %p1770_p6 = por %p179_p4, %p178_p3 }
   0xc   : > { %p1409_p7 = scmp.ge.s32.totalorder %s1682_s27, 1  ;;  %p247_p8 = scmp.lt.s32.totalorder %s1682_s27, 3 }
   0xe   : > { %p248_p9 = pnand %p1409_p7, %p247_p8 }
  0x10   : > { %251 = sbr.rel (%p248_p9) target bundleno = 651 (0x28b), region = 44 }
  0x17   : > { %s1412_s13 = sshll.u32 %s1749_s28, 2  ;;  %v1684_v0 = vmov 0.0   ;;  %v296_v1 = vld [vmem:[%s2590_s2] sm:$0xff]  ;;  %v1685_v2 = vmov 0   ;;  %v298_v3 = vld [vmem:[%s2590_s2 + $0x10] sm:$0xff]  ;;  %v297_v4 = vld [vmem:[%s2590_s2 + $0x8] sm:$0xff] }
  0x18   : > { %p285_p10 = scmp.lt.s32.totalorder %s1412_s13, 7  ;;  %418 = vmatprep.mubr.f32.mxu1 %v1684_v0  ;;  %921 = vmatprep.mubr.f32.mxu0 %v1684_v0  ;;  %v299_v5 = vld [vmem:[%s2590_s2 + $0x18] sm:$0xff]  ;;  %v292_v6 = vld [vmem:[%s2589_s1] sm:$0xff]  ;;  %vm341_vm0 = vcmask 64512   ;;  %v310_v12 = vld [vmem:[%s2592_s4 + $0x8] sm:$0xff]  ;;  %vm496_vm1 = vcmask 261120  }
  0x19   : > { %1518 = vset.pattern.permute.xlu0 %v1685_v2  ;;  %1519 = vset.pattern.permute.xlu1 %v1685_v2  ;;  %v309_v11 = vld [vmem:[%s2592_s4] sm:$0xff]  ;;  %v293_v13 = vld [vmem:[%s2589_s1 + $0x8] sm:$0xff]  ;;  %v311_v14 = vld [vmem:[%s2592_s4 + $0x10] sm:$0xff]  ;;  %s1686_s17 = smov [#allocation4]  }
  0x1a   : > { %s2686_s13 = smov (!%p285_p10, %s1412_s13), 7  ;;  %323 = vperm.xlu0 %1518, %v296_v1   ;;  %333 = vperm.xlu1 %1519, %v298_v3   ;;  %v312_v15 = vld [vmem:[%s2592_s4 + $0x18] sm:$0xff]  ;;  %v294_v16 = vld [vmem:[%s2589_s1 + $0x10] sm:$0xff]  ;;  %v314_v17 = vld [vmem:[%s2592_s4 + $0x28] sm:$0xff]  ;;  %s1592_s18 = sshll.u32 %s1686_s17, 4  ;;  %s1593_s18 = int_to_ptr.vmem [resolvable:$false] %s1592_s18 }
  0x1b   : > { %s1413_s22 = sshll.u32 %s2686_s13, 3  ;;  %v315_v18 = vld [vmem:[%s2592_s4 + $0x30] sm:$0xff]  ;;  %v295_v19 = vld [vmem:[%s2589_s1 + $0x18] sm:$0xff]  ;;  %v313_v20 = vld [vmem:[%s2592_s4 + $0x20] sm:$0xff] }
  0x1c   : > { %s1794_s8 = scalar_lea.vmem %s2588_s0, %s1413_s22  ;;  %v316_v21 = vld [vmem:[%s2592_s4 + $0x38] sm:$0xff]  ;;  %v317_v22 = vld [vmem:[%s2592_s4 + $0x40] sm:$0xff]  ;;  %s1454_s22 = sshll.u32 %s1749_s28, 9 }
  0x1d   : > { %v1800_v7 = vld [vmem:[%s1794_s8 + $0x8] sm:$0xff]  ;;  %v1803_v8 = vld [vmem:[%s1794_s8 + $0x18] sm:$0xff]  ;;  %v1806_v9 = vld [vmem:[%s1794_s8] sm:$0xff]  ;;  %s2508_s14 = scalar_lea.hbm %s2595_s7, %s1454_s22 }
  0x1e   : > { %328 = vperm.xlu0 %1518, %v297_v4   ;;  %338 = vperm.xlu1 %1519, %v299_v5   ;;  %v1811_v10 = vld [vmem:[%s1794_s8 + $0x10] sm:$0xff]  ;;  %v318_v23 = vld [vmem:[%s2593_s5] sm:$0xff] }
  0x1f   : > { %354 = vmatprep.subr.mxu1 %v1800_v7  ;;  %857 = vmatprep.subr.mxu0 %v1803_v8 }
  0x20   : > { %355 = vmatpush1.msra.mxu1 %v1806_v9  ;;  %858 = vmatpush1.msra.mxu0 %v1811_v10 }
  0x21   : > { %1414 = vmatmul.mubr.msk.f32.vlgmr.msra.gmra.mrb[0].mxu1 %vm341_vm0, %v292_v6  ;;  %1429 = vmatmul.mubr.msk.f32.vlgmr.msra.gmra.mrb[0].mxu0 %vm341_vm0, %v292_v6 }
  0x22   : > { %424 = vmatprep.mubr.f32.mxu1 %v1684_v0  ;;  %927 = vmatprep.mubr.f32.mxu0 %v1684_v0 }
  0x23   : > { %453 = vperm.xlu0 %1518, %v309_v11   ;;  %458 = vperm.xlu1 %1519, %v310_v12  }
  0x25   : > { %1415 = vmatmul.mubr.msk.f32.gmra.mrb[2].mxu1 %vm341_vm0, %v293_v13  ;;  %1430 = vmatmul.mubr.msk.f32.gmra.mrb[2].mxu0 %vm341_vm0, %v293_v13 }
  0x26   : > { %430 = vmatprep.mubr.f32.mxu1 %v1684_v0  ;;  %933 = vmatprep.mubr.f32.mxu0 %v1684_v0 }
  0x27   : > { %463 = vperm.xlu0 %1518, %v311_v14   ;;  %468 = vperm.xlu1 %1519, %v312_v15  }
  0x29   : > { %1416 = vmatmul.mubr.msk.f32.gmra.mrb[4].mxu1 %vm341_vm0, %v294_v16  ;;  %1431 = vmatmul.mubr.msk.f32.gmra.mrb[4].mxu0 %vm341_vm0, %v294_v16 }
  0x2a   : > { %436 = vmatprep.mubr.f32.mxu1 %v1684_v0  ;;  %939 = vmatprep.mubr.f32.mxu0 %v1684_v0 }
  0x2b   : > { %478 = vperm.xlu0 %1518, %v314_v17   ;;  %483 = vperm.xlu1 %1519, %v315_v18  }
  0x2d   : > { %1417 = vmatmul.mubr.msk.f32.gmra.mrb[6].mxu1 %vm341_vm0, %v295_v19  ;;  %1432 = vmatmul.mubr.msk.f32.gmra.mrb[6].mxu0 %vm341_vm0, %v295_v19 }
  0x2e   : > { %588 = vmatprep.mubr.f32.mxu1 %v1684_v0  ;;  %1018 = vmatprep.mubr.f32.mxu0 %v1684_v0 }
  0x2f   : > { %473 = vperm.xlu0 %1518, %v313_v20   ;;  %488 = vperm.xlu1 %1519, %v316_v21  }
  0x33   : > { %493 = vperm.xlu0 %1518, %v317_v22   ;;  %809 = vperm.xlu1 %1519, %v318_v23  }
  0x99   : > { %v324_v24 = vpop.permute.xlu0 %323  ;;  %v334_v30 = vpop.permute.xlu1 %333 }
  0x9d   : > { %v329_v29 = vpop.permute.xlu0 %328  ;;  %v339_v59 = vpop.permute.xlu1 %338 }
  0xf4   : > { %v420_v25 = vpop.f32.mrb[0].mxu1  ;;  %v923_v26 = vpop.f32.mrb[0].mxu0 }
  0xf5   : > { %v422_v27 = vpop.f32.mrb[1].mxu1  ;;  %v925_v28 = vpop.f32.mrb[1].mxu0  ;;  %v421_v31 = vadd.f32 %v420_v25, %v324_v24  ;;  %v924_v32 = vadd.f32 %v923_v26, %v324_v24  ;;  %v300_v25 = vld [vmem:[%s2591_s3] sm:$0xff]  ;;  %v301_v26 = vld [vmem:[%s2591_s3 + $0x8] sm:$0xff] }
  0xf6   : > { %v423_v33 = vadd.f32 %v422_v27, %v324_v24  ;;  %v926_v34 = vadd.f32 %v925_v28, %v324_v24  ;;  %v302_v27 = vld [vmem:[%s2591_s3 + $0x10] sm:$0xff]  ;;  %v303_v28 = vld [vmem:[%s2591_s3 + $0x18] sm:$0xff] }
  0xf7   : > { %v443_v43 = vmax.f32 %v421_v31, 0.0  ;;  %v946_v44 = vmax.f32 %v924_v32, 0.0  ;;  %v306_v31 = vld [vmem:[%s2591_s3 + $0x30] sm:$0xff]  ;;  %v307_v32 = vld [vmem:[%s2591_s3 + $0x38] sm:$0xff] }
  0xf8   : > { %v426_v35 = vpop.f32.mrb[2].mxu1  ;;  %v929_v36 = vpop.f32.mrb[2].mxu0  ;;  %v444_v47 = vmax.f32 %v423_v33, 0.0  ;;  %v947_v48 = vmax.f32 %v926_v34, 0.0  ;;  %v308_v33 = vld [vmem:[%s2591_s3 + $0x40] sm:$0xff] }
  0xf9   : > { %v427_v37 = vadd.f32 %v426_v35, %v329_v29  ;;  %v930_v38 = vadd.f32 %v929_v36, %v329_v29  ;;  %v428_v39 = vpop.f32.mrb[3].mxu1  ;;  %v931_v40 = vpop.f32.mrb[3].mxu0 }
  0xfa   : > { %v429_v41 = vadd.f32 %v428_v39, %v329_v29  ;;  %v932_v42 = vadd.f32 %v931_v40, %v329_v29  ;;  %v304_v29 = vld [vmem:[%s2591_s3 + $0x20] sm:$0xff]  ;;  %v454_v34 = vpop.permute.xlu0 %453  ;;  %v459_v39 = vpop.permute.xlu1 %458 }
  0xfb   : > { %v445_v45 = vmax.f32 %v427_v37, 0.0  ;;  %v948_v46 = vmax.f32 %v930_v38, 0.0 }
  0xfc   : > { %v446_v49 = vmax.f32 %v429_v41, 0.0  ;;  %v949_v50 = vmax.f32 %v932_v42, 0.0  ;;  %v432_v51 = vpop.f32.mrb[4].mxu1  ;;  %v935_v52 = vpop.f32.mrb[4].mxu0 }
  0xfd   : > { %v1458_v53 = vpack.c.bf16 %v445_v45, %v443_v43  ;;  %v1466_v54 = vpack.c.bf16 %v948_v46, %v946_v44  ;;  %v434_v55 = vpop.f32.mrb[5].mxu1  ;;  %v937_v56 = vpop.f32.mrb[5].mxu0  ;;  %v433_v60 = vadd.f32 %v432_v51, %v334_v30  ;;  %v936_v61 = vadd.f32 %v935_v52, %v334_v30 }
  0xfe   : > { %v1456_v57 = vpack.c.bf16 %v446_v49, %v444_v47  ;;  %v1464_v58 = vpack.c.bf16 %v949_v50, %v947_v48  ;;  %v435_v62 = vadd.f32 %v434_v55, %v334_v30  ;;  %v938_v63 = vadd.f32 %v937_v56, %v334_v30  ;;  %v305_v30 = vld [vmem:[%s2591_s3 + $0x28] sm:$0xff]  ;;  %v464_v51 = vpop.permute.xlu0 %463 }
  0xff   : > { %v447_v13 = vmax.f32 %v433_v60, 0.0  ;;  %v950_v14 = vmax.f32 %v936_v61, 0.0 }
 0x100   : > { %v438_v1 = vpop.f32.mrb[6].mxu1  ;;  %1457 = vmatprep.subr.bf16.mxu1 %v1456_v57  ;;  %v941_v2 = vpop.f32.mrb[6].mxu0  ;;  %1465 = vmatprep.subr.bf16.mxu0 %v1464_v58  ;;  %v448_v17 = vmax.f32 %v435_v62, 0.0  ;;  %v951_v18 = vmax.f32 %v938_v63, 0.0 }
 0x101   : > { %v439_v3 = vadd.f32 %v438_v1, %v339_v59  ;;  %v942_v4 = vadd.f32 %v941_v2, %v339_v59  ;;  %v440_v5 = vpop.f32.mrb[7].mxu1  ;;  %1459 = vmatpush1.bf16.msra.mxu1 %v1458_v53  ;;  %v943_v6 = vpop.f32.mrb[7].mxu0  ;;  %1467 = vmatpush1.bf16.msra.mxu0 %v1466_v54 }
 0x102   : > { %v441_v11 = vadd.f32 %v440_v5, %v339_v59  ;;  %v944_v12 = vadd.f32 %v943_v6, %v339_v59  ;;  %v469_v1 = vpop.permute.xlu1 %468 }
 0x103   : > { %v449_v15 = vmax.f32 %v439_v3, 0.0  ;;  %v952_v16 = vmax.f32 %v942_v4, 0.0 }
 0x104   : > { %v450_v19 = vmax.f32 %v441_v11, 0.0  ;;  %v953_v20 = vmax.f32 %v944_v12, 0.0 }
 0x105   : > { %v1462_v21 = vpack.c.bf16 %v449_v15, %v447_v13  ;;  %v1470_v22 = vpack.c.bf16 %v952_v16, %v950_v14 }
 0x106   : > { %v1460_v23 = vpack.c.bf16 %v450_v19, %v448_v17  ;;  %v1468_v24 = vpack.c.bf16 %v953_v20, %v951_v18  ;;  %v1931_v18 = vpop.permute.xlu0 %478 }
 0x108   : > { %1461 = vmatprep.subr.bf16.mxu1 %v1460_v23  ;;  %1469 = vmatprep.subr.bf16.mxu0 %v1468_v24 }
 0x109   : > { %1463 = vmatpush1.bf16.msra.mxu1 %v1462_v21  ;;  %1471 = vmatpush1.bf16.msra.mxu0 %v1470_v22 }
 0x10c   : > { %1418 = vmatmul.mubr.msk.f32.vlgmr.msra.gmra.mrb[8].mxu1 %vm496_vm1, %v300_v25  ;;  %1433 = vmatmul.mubr.msk.f32.vlgmr.msra.gmra.mrb[8].mxu0 %vm496_vm1, %v300_v25 }
 0x10d   : > { %594 = vmatprep.mubr.f32.mxu1 %v1684_v0  ;;  %1024 = vmatprep.mubr.f32.mxu0 %v1684_v0 }
 0x110   : > { %1419 = vmatmul.mubr.msk.f32.gmra.mrb[10].mxu1 %vm496_vm1, %v301_v26  ;;  %1434 = vmatmul.mubr.msk.f32.gmra.mrb[10].mxu0 %vm496_vm1, %v301_v26 }
 0x111   : > { %600 = vmatprep.mubr.f32.mxu1 %v1684_v0  ;;  %1030 = vmatprep.mubr.f32.mxu0 %v1684_v0 }
 0x114   : > { %1420 = vmatmul.mubr.msk.f32.gmra.mrb[12].mxu1 %vm496_vm1, %v302_v27  ;;  %1435 = vmatmul.mubr.msk.f32.gmra.mrb[12].mxu0 %vm496_vm1, %v302_v27 }
 0x115   : > { %606 = vmatprep.mubr.f32.mxu1 %v1684_v0  ;;  %1036 = vmatprep.mubr.f32.mxu0 %v1684_v0 }
 0x118   : > { %1421 = vmatmul.mubr.msk.f32.gmra.mrb[14].mxu1 %vm496_vm1, %v303_v28  ;;  %1436 = vmatmul.mubr.msk.f32.gmra.mrb[14].mxu0 %vm496_vm1, %v303_v28 }
 0x119   : > { %612 = vmatprep.mubr.f32.mxu1 %v1684_v0  ;;  %1042 = vmatprep.mubr.f32.mxu0 %v1684_v0 }
 0x11c   : > { %1422 = vmatmul.mubr.msk.f32.gmra.mrb[16].mxu1 %vm496_vm1, %v304_v29  ;;  %1437 = vmatmul.mubr.msk.f32.gmra.mrb[16].mxu0 %vm496_vm1, %v304_v29 }
 0x11d   : > { %618 = vmatprep.mubr.f32.mxu1 %v1684_v0  ;;  %1048 = vmatprep.mubr.f32.mxu0 %v1684_v0 }
 0x120   : > { %1423 = vmatmul.mubr.msk.f32.gmra.mrb[18].mxu1 %vm496_vm1, %v305_v30  ;;  %1438 = vmatmul.mubr.msk.f32.gmra.mrb[18].mxu0 %vm496_vm1, %v305_v30 }
 0x121   : > { %624 = vmatprep.mubr.f32.mxu1 %v1684_v0  ;;  %1054 = vmatprep.mubr.f32.mxu0 %v1684_v0 }
 0x124   : > { %1424 = vmatmul.mubr.msk.f32.gmra.mrb[20].mxu1 %vm496_vm1, %v306_v31  ;;  %1439 = vmatmul.mubr.msk.f32.gmra.mrb[20].mxu0 %vm496_vm1, %v306_v31 }
 0x125   : > { %630 = vmatprep.mubr.f32.mxu1 %v1684_v0  ;;  %1060 = vmatprep.mubr.f32.mxu0 %v1684_v0 }
 0x128   : > { %1425 = vmatmul.mubr.msk.f32.gmra.mrb[22].mxu1 %vm496_vm1, %v307_v32  ;;  %1440 = vmatmul.mubr.msk.f32.gmra.mrb[22].mxu0 %vm496_vm1, %v307_v32 }
 0x129   : > { %636 = vmatprep.mubr.f32.mxu1 %v1684_v0  ;;  %1066 = vmatprep.mubr.f32.mxu0 %v1684_v0 }
 0x12c   : > { %1426 = vmatmul.mubr.msk.f32.gmra.mrb[24].mxu1 %vm496_vm1, %v308_v33  ;;  %1441 = vmatmul.mubr.msk.f32.gmra.mrb[24].mxu0 %vm496_vm1, %v308_v33 }
 0x1df   : > { %v590_v35 = vpop.f32.mrb[8].mxu1  ;;  %v1020_v36 = vpop.f32.mrb[8].mxu0 }
 0x1e0   : > { %v592_v37 = vpop.f32.mrb[9].mxu1  ;;  %v1022_v38 = vpop.f32.mrb[9].mxu0  ;;  %v591_v42 = vadd.f32 %v590_v35, %v454_v34  ;;  %v1021_v43 = vadd.f32 %v1020_v36, %v454_v34 }
 0x1e1   : > { %v593_v47 = vadd.f32 %v592_v37, %v454_v34  ;;  %v1023_v48 = vadd.f32 %v1022_v38, %v454_v34 }
 0x1e3   : > { %v596_v40 = vpop.f32.mrb[10].mxu1  ;;  %v1026_v41 = vpop.f32.mrb[10].mxu0 }
 0x1e4   : > { %v597_v44 = vadd.f32 %v596_v40, %v459_v39  ;;  %v1027_v0 = vadd.f32 %v1026_v41, %v459_v39  ;;  %v598_v45 = vpop.f32.mrb[11].mxu1  ;;  %v1028_v46 = vpop.f32.mrb[11].mxu0 }
 0x1e5   : > { %v599_v49 = vadd.f32 %v598_v45, %v459_v39  ;;  %v1029_v50 = vadd.f32 %v1028_v46, %v459_v39  ;;  %v1941_v39 = vpop.permute.xlu1 %483 }
 0x1e6   : > { %v643_v52 = vmin.f32 %v591_v42, %v597_v44  ;;  %v645_v53 = vmax.f32 %v591_v42, %v597_v44  ;;  %v1073_v54 = vmin.f32 %v1021_v43, %v1027_v0  ;;  %v1075_v55 = vmax.f32 %v1021_v43, %v1027_v0 }
 0x1e7   : > { %v644_v56 = vmin.f32 %v593_v47, %v599_v49  ;;  %v646_v57 = vmax.f32 %v593_v47, %v599_v49  ;;  %v1074_v58 = vmin.f32 %v1023_v48, %v1029_v50  ;;  %v1076_v59 = vmax.f32 %v1023_v48, %v1029_v50  ;;  %v602_v60 = vpop.f32.mrb[12].mxu1  ;;  %v1032_v61 = vpop.f32.mrb[12].mxu0 }
 0x1e8   : > { %v604_v62 = vpop.f32.mrb[13].mxu1  ;;  %v1034_v63 = vpop.f32.mrb[13].mxu0  ;;  %v603_v4 = vadd.f32 %v602_v60, %v464_v51  ;;  %v1033_v5 = vadd.f32 %v1032_v61, %v464_v51 }
 0x1e9   : > { %v605_v14 = vadd.f32 %v604_v62, %v464_v51  ;;  %v1035_v15 = vadd.f32 %v1034_v63, %v464_v51  ;;  %v474_v60 = vpop.permute.xlu0 %473 }
 0x1eb   : > { %v608_v2 = vpop.f32.mrb[14].mxu1  ;;  %v1038_v3 = vpop.f32.mrb[14].mxu0 }
 0x1ec   : > { %v609_v6 = vadd.f32 %v608_v2, %v469_v1  ;;  %v1039_v11 = vadd.f32 %v1038_v3, %v469_v1  ;;  %v610_v12 = vpop.f32.mrb[15].mxu1  ;;  %v1040_v13 = vpop.f32.mrb[15].mxu0 }
 0x1ed   : > { %v611_v16 = vadd.f32 %v610_v12, %v469_v1  ;;  %v1041_v17 = vadd.f32 %v1040_v13, %v469_v1 }
 0x1ee   : > { %v647_v19 = vmin.f32 %v603_v4, %v609_v6  ;;  %v649_v20 = vmax.f32 %v603_v4, %v609_v6  ;;  %v1077_v21 = vmin.f32 %v1033_v5, %v1039_v11  ;;  %v1079_v22 = vmax.f32 %v1033_v5, %v1039_v11 }
 0x1ef   : > { %v648_v23 = vmin.f32 %v605_v14, %v611_v16  ;;  %v650_v24 = vmax.f32 %v605_v14, %v611_v16  ;;  %v1078_v25 = vmin.f32 %v1035_v15, %v1041_v17  ;;  %v1080_v26 = vmax.f32 %v1035_v15, %v1041_v17  ;;  %v614_v27 = vpop.f32.mrb[16].mxu1  ;;  %v1044_v28 = vpop.f32.mrb[16].mxu0 }
 0x1f0   : > { %v1933_v29 = vmin.f32 %v643_v52, %v647_v19  ;;  %v653_v30 = vmax.f32 %v643_v52, %v647_v19  ;;  %v655_v31 = vmin.f32 %v645_v53, %v649_v20  ;;  %v1935_v32 = vmax.f32 %v645_v53, %v649_v20  ;;  %v616_v33 = vpop.f32.mrb[17].mxu1  ;;  %v1046_v34 = vpop.f32.mrb[17].mxu0 }
 0x1f1   : > { %v1937_v35 = vmin.f32 %v1073_v54, %v1077_v21  ;;  %v1083_v36 = vmax.f32 %v1073_v54, %v1077_v21  ;;  %v1085_v37 = vmin.f32 %v1075_v55, %v1079_v22  ;;  %v1939_v38 = vmax.f32 %v1075_v55, %v1079_v22  ;;  %v1987_v14 = vpop.permute.xlu1 %488 }
 0x1f2   : > { %2611 = vst [vmem:[#allocation8_spill] sm:$0xff] %v1935_v32  ;;  %v1943_v40 = vmin.f32 %v655_v31, %v653_v30  ;;  %v1945_v41 = vmax.f32 %v655_v31, %v653_v30  ;;  %v1947_v42 = vmin.f32 %v644_v56, %v648_v23  ;;  %v654_v0 = vmax.f32 %v644_v56, %v648_v23 }
 0x1f3   : > { %2612 = vst [vmem:[#allocation9_spill] sm:$0xff] %v1939_v38  ;;  %v1949_v43 = vmin.f32 %v1085_v37, %v1083_v36  ;;  %v1951_v44 = vmax.f32 %v1085_v37, %v1083_v36  ;;  %v620_v45 = vpop.f32.mrb[18].mxu1  ;;  %v1050_v46 = vpop.f32.mrb[18].mxu0  ;;  %v656_v48 = vmin.f32 %v646_v57, %v650_v24  ;;  %v1955_v49 = vmax.f32 %v646_v57, %v650_v24 }
 0x1f4   : > { %v622_v50 = vpop.f32.mrb[19].mxu1  ;;  %v1052_v51 = vpop.f32.mrb[19].mxu0  ;;  %v1959_v53 = vmin.f32 %v1074_v58, %v1078_v25  ;;  %v1084_v54 = vmax.f32 %v1074_v58, %v1078_v25  ;;  %v1086_v55 = vmin.f32 %v1076_v59, %v1080_v26  ;;  %v1965_v62 = vmax.f32 %v1076_v59, %v1080_v26 }
 0x1f5   : > { %2613 = vst [vmem:[#allocation10_spill] sm:$0xff] %v1955_v49  ;;  %v1961_v61 = vmin.f32 %v656_v48, %v654_v0  ;;  %v1963_v56 = vmax.f32 %v656_v48, %v654_v0  ;;  %v615_v4 = vadd.f32 %v614_v27, %v474_v60  ;;  %v1045_v5 = vadd.f32 %v1044_v28, %v474_v60 }
 0x1f6   : > { %2615 = vst [vmem:[#allocation12_spill] sm:$0xff] %v1965_v62  ;;  %v1967_v63 = vmin.f32 %v1086_v55, %v1084_v54  ;;  %v1969_v57 = vmax.f32 %v1086_v55, %v1084_v54  ;;  %v1974_v58 = vadd.f32 %v620_v45, %v1931_v18  ;;  %vm759_vm2 = vcmp.ge.f32.partialorder %v1806_v9, %v1933_v29 }
 0x1f7   : > { %2614 = vst [vmem:[#allocation11_spill] sm:$0xff] %v1963_v56  ;;  %v626_v1 = vpop.f32.mrb[20].mxu1  ;;  %v1056_v2 = vpop.f32.mrb[20].mxu0  ;;  %v1985_v13 = vadd.f32 %v1050_v46, %v1931_v18  ;;  %vm1189_vm3 = vcmp.ge.f32.partialorder %v1811_v10, %v1937_v35  ;;  %v617_v17 = vadd.f32 %v616_v33, %v474_v60  ;;  %v1047_v24 = vadd.f32 %v1046_v34, %v474_v60 }
 0x1f8   : > { %2616 = vst [vmem:[#allocation13_spill] sm:$0xff] %v1969_v57  ;;  %v628_v6 = vpop.f32.mrb[21].mxu1  ;;  %v1976_v11 = vpop.f32.mrb[21].mxu0  ;;  %v665_v15 = vand.u32 2147483647, %v1974_v58  ;;  %v767_v16 = vsel %vm759_vm2, %v1974_v58, %v615_v4  ;;  %v2002_v26 = vadd.f32 %v622_v50, %v1931_v18  ;;  %vm760_vm4 = vcmp.ge.f32.partialorder %v1800_v7, %v1947_v42 }
 0x1f9   : > { %v1095_v19 = vand.u32 2147483647, %v1985_v13  ;;  %v1197_v20 = vsel %vm1189_vm3, %v1985_v13, %v1045_v5  ;;  %v2013_v33 = vadd.f32 %v1052_v51, %v1931_v18  ;;  %vm1190_vm5 = vcmp.ge.f32.partialorder %v1803_v8, %v1959_v53  ;;  %v810_v60 = vpop.permute.xlu1 %809 }
 0x1fa   : > { %v667_v25 = vsub.f32 0.0, %v665_v15  ;;  %v666_v37 = vand.u32 2147483647, %v2002_v26  ;;  %v768_v0 = vsel %vm760_vm4, %v2002_v26, %v617_v17  ;;  %v2026_v51 = vadd.f32 %v626_v1, %v1941_v39 }
 0x1fb   : > { %v1997_v22 = vpop.f32.mrb[22].mxu1  ;;  %v1999_v23 = vpop.f32.mrb[22].mxu0  ;;  %v1097_v31 = vsub.f32 0.0, %v1095_v19  ;;  %v1096_v46 = vand.u32 2147483647, %v2013_v33  ;;  %v1198_v48 = vsel %vm1190_vm5, %v2013_v33, %v1047_v24  ;;  %vm761_vm6 = vcmp.ge.f32.partialorder %v1806_v9, %v1943_v40 }
 0x1fc   : > { %v2006_v28 = vpop.f32.mrb[23].mxu1  ;;  %v2008_v30 = vpop.f32.mrb[23].mxu0  ;;  %v669_v36 = vmul.f32 1.442695, %v667_v25  ;;  %v668_v18 = vsub.f32 0.0, %v666_v37  ;;  %v2039_v5 = vsel %vm761_vm6, %v1943_v40, %v1933_v29  ;;  %v2046_v17 = vadd.f32 %v810_v60, %v1933_v29 }
 0x1fd   : > { %2617 = vst [vmem:[#allocation14_spill] sm:$0xff] %v2008_v30  ;;  %v1099_v45 = vmul.f32 1.442695, %v1097_v31  ;;  %v1098_v4 = vsub.f32 0.0, %v1096_v46  ;;  %v697_v24 = vand.u32 2147483647, %v2026_v51  ;;  %v2053_v25 = vsel %vm761_vm6, %v2026_v51, %v767_v16 }
 0x1fe   : > { %1520 = vpow2.f32 %v669_v36  ;;  %v671_v19 = vmul.f32 1.442695, %v668_v18  ;;  %v2056_v36 = vadd.f32 %v1056_v2, %v1941_v39  ;;  %vm1191_vm7 = vcmp.ge.f32.partialorder %v1811_v10, %v1949_v43 }
 0x1ff   : > { %v2023_v50 = vpop.f32.mrb[24].mxu1  ;;  %v2030_v54 = vpop.f32.mrb[24].mxu0  ;;  %1522 = vpow2.f32 %v1099_v45  ;;  %v1101_v31 = vmul.f32 1.442695, %v1098_v4  ;;  %v699_v45 = vsub.f32 0.0, %v697_v24  ;;  %v2067_v46 = vsel %vm1191_vm7, %v1949_v43, %v1937_v35 }
 0x200   : > { %2618 = vst [vmem:[#allocation15_spill] sm:$0xff] %v2023_v50  ;;  %2619 = vst [vmem:[#allocation16_spill] sm:$0xff] %v2030_v54  ;;  %v2032_v55 = vpop.f32.mrb[25].mxu1  ;;  %v2043_v15 = vpop.f32.mrb[25].mxu0  ;;  %1524 = vpow2.f32 %v671_v19  ;;  %v2070_v16 = vadd.f32 %v628_v6, %v1941_v39  ;;  %v2073_v2 = vadd.f32 %v1937_v35, %v810_v60  ;;  %v1127_v18 = vand.u32 2147483647, %v2056_v36 }
 0x201   : > { %2620 = vst [vmem:[#allocation17_spill] sm:$0xff] %v2032_v55  ;;  %2621 = vst [vmem:[#allocation18_spill] sm:$0xff] %v2043_v15  ;;  %1526 = vpow2.f32 %v1101_v31  ;;  %v2080_v4 = vsel %vm1191_vm7, %v2056_v36, %v1197_v20  ;;  %v2083_v19 = vadd.f32 %v810_v60, %v1947_v42  ;;  %v701_v24 = vmul.f32 1.442695, %v699_v45 }
 0x202   : > { %v698_v59 = vand.u32 2147483647, %v2070_v16  ;;  %vm762_vm8 = vcmp.ge.f32.partialorder %v1800_v7, %v1961_v61  ;;  %v1129_v6 = vsub.f32 0.0, %v1127_v18  ;;  %v2105_v18 = vadd.f32 %v1976_v11, %v1941_v39 }
 0x203   : > { %v2092_v31 = vsel %vm762_vm8, %v2070_v16, %v768_v0  ;;  %v2099_v20 = vsel %vm762_vm8, %v1961_v61, %v1947_v42  ;;  %1528 = vpow2.f32 %v701_v24  ;;  %vm1192_vm9 = vcmp.ge.f32.partialorder %v1803_v8, %v1967_v63 }
 0x204   : > { %2622 = vst [vmem:[#allocation19_spill] sm:$0xff] %v2092_v31  ;;  %2623 = vst [vmem:[#allocation20_spill] sm:$0xff] %v2099_v20  ;;  %v700_v3 = vsub.f32 0.0, %v698_v59  ;;  %v2110_v0 = vadd.f32 %v1959_v53, %v810_v60  ;;  %v1131_v52 = vmul.f32 1.442695, %v1129_v6  ;;  %v2117_v47 = vsel %vm1192_vm9, %v1967_v63, %v1959_v53 }
 0x205   : > { %2624 = vst [vmem:[#allocation21_spill] sm:$0xff] %v2117_v47  ;;  %v1128_v45 = vand.u32 2147483647, %v2105_v18  ;;  %v2127_v60 = vsel %vm1192_vm9, %v2105_v18, %v1198_v48  ;;  %v2134_v49 = vadd.f32 %v1997_v22, %v1987_v14  ;;  %vm763_vm12 = vcmp.ge.f32.partialorder %v1806_v9, %v1945_v41  ;;  %v494_v9 = vpop.permute.xlu0 %493 }
 0x206   : > { %v703_v11 = vmul.f32 1.442695, %v700_v3  ;;  %2625 = vst [vmem:[#allocation22_spill] sm:$0xff] %v2127_v60  ;;  %1530 = vpow2.f32 %v1131_v52  ;;  %vm1193_vm1 = vcmp.ge.f32.partialorder %v1811_v10, %v1951_v44 }
 0x207   : > { %v1130_v39 = vsub.f32 0.0, %v1128_v45  ;;  %2626 = vst [vmem:[#allocation23_spill] sm:$0xff] %v2134_v49  ;;  %v729_v47 = vand.u32 2147483647, %v2134_v49 }
 0x208   : > { %v1521_v24 = vpop.eup %1520  ;;  %1532 = vpow2.f32 %v703_v11 }
 0x209   : > { %v1523_v6 = vpop.eup %1522  ;;  %v673_v37 = vadd.f32 1.0, %v1521_v24  ;;  %v676_v1 = vmul.f32 -0.5, %v1521_v24  ;;  %v679_v3 = vand.u32 2147483647, %v1521_v24  ;;  %v1133_v22 = vmul.f32 1.442695, %v1130_v39 }
 0x20a   : > { %v1103_v27 = vadd.f32 1.0, %v1523_v6  ;;  %v1106_v59 = vmul.f32 -0.5, %v1523_v6  ;;  %v1525_v62 = vpop.eup %1524  ;;  %v1109_v48 = vand.u32 2147483647, %v1523_v6  ;;  %v731_v57 = vsub.f32 0.0, %v729_v47 }
 0x20b   : > { %1534 = vlog2.f32 %v673_v37  ;;  %v677_v15 = vadd.f32 1.0, %v676_v1  ;;  %v1527_v34 = vpop.eup %1526  ;;  %v682_v55 = vadd.f32 1.0, %v1525_v62  ;;  %v685_v38 = vmul.f32 -0.5, %v1525_v62 }
 0x20c   : > { %1536 = vlog2.f32 %v1103_v27  ;;  %v1107_v52 = vadd.f32 1.0, %v1106_v59  ;;  %v1112_v11 = vadd.f32 1.0, %v1527_v34  ;;  %v1115_v37 = vmul.f32 -0.5, %v1527_v34 }
 0x20d   : > { %vm2139_vm10 = vcmp.lt.f32.partialorder %v679_v3, 0.0004427343  ;;  %1538 = vlog2.f32 %v682_v55  ;;  %v688_v27 = vand.u32 2147483647, %v1525_v62  ;;  %v1529_v12 = vpop.eup %1528  ;;  %v678_v32 = vmul.f32 %v1521_v24, %v677_v15 }
 0x20e   : > { %vm2143_vm11 = vcmp.lt.f32.partialorder %v1109_v48, 0.0004427343  ;;  %1540 = vlog2.f32 %v1112_v11  ;;  %v1118_v21 = vand.u32 2147483647, %v1527_v34  ;;  %v1108_v54 = vmul.f32 %v1523_v6, %v1107_v52 }
 0x20f   : > { %v686_v60 = vadd.f32 1.0, %v685_v38  ;;  %v705_v45 = vadd.f32 1.0, %v1529_v12  ;;  %v708_v3 = vmul.f32 -0.5, %v1529_v12  ;;  %v1116_v50 = vadd.f32 1.0, %v1115_v37 }
 0x210   : > { %1542 = vpow2.f32 %v1133_v22  ;;  %v1531_v55 = vpop.eup %1530  ;;  %vm2150_vm13 = vcmp.lt.f32.partialorder %v688_v27, 0.0004427343  ;;  %v711_v24 = vand.u32 2147483647, %v1529_v12  ;;  %v2159_v38 = vsel %vm763_vm12, %v2134_v49, %v2053_v25 }
 0x211   : > { %1544 = vlog2.f32 %v705_v45  ;;  %2633 = vst [vmem:[#allocation24_spill] sm:$0xff] %v2159_v38  ;;  %vm2161_vm14 = vcmp.lt.f32.partialorder %v1118_v21, 0.0004427343  ;;  %v1135_v6 = vadd.f32 1.0, %v1531_v55  ;;  %v1138_v48 = vmul.f32 -0.5, %v1531_v55 }
 0x212   : > { %v1533_v39 = vpop.eup %1532  ;;  %v733_v52 = vmul.f32 1.442695, %v731_v57  ;;  %v687_v37 = vmul.f32 %v1525_v62, %v686_v60  ;;  %v709_v27 = vadd.f32 1.0, %v708_v3  ;;  %v1117_v31 = vmul.f32 %v1527_v34, %v1116_v50 }
 0x213   : > { %v714_v45 = vadd.f32 1.0, %v1533_v39  ;;  %v717_v22 = vmul.f32 -0.5, %v1533_v39  ;;  %1546 = vlog2.f32 %v1135_v6  ;;  %v1141_v56 = vand.u32 2147483647, %v1531_v55 }
 0x214   : > { %vm2165_vm15 = vcmp.lt.f32.partialorder %v711_v24, 0.0004427343  ;;  %v1139_v21 = vadd.f32 1.0, %v1138_v48  ;;  %v720_v49 = vand.u32 2147483647, %v1533_v39  ;;  %v2176_v34 = vsel %vm763_vm12, %v1945_v41, %v2039_v5 }
 0x215   : > { %v1535_v11 = vpop.eup %1534  ;;  %1548 = vlog2.f32 %v714_v45  ;;  %v718_v62 = vadd.f32 1.0, %v717_v22  ;;  %v2638_v50 = vmax.f32 %v1974_v58, 0.0  ;;  %v710_v24 = vmul.f32 %v1529_v12, %v709_v27 }
 0x216   : > { %v1537_v30 = vpop.eup %1536  ;;  %v675_v20 = vmul.f32 0.6931472, %v1535_v11  ;;  %1550 = vpow2.f32 %v733_v52  ;;  %v2639_v1 = vmax.f32 %v1985_v13, 0.0  ;;  %vm2188_vm0 = vcmp.lt.f32.partialorder %v1141_v56, 0.0004427343 }
 0x217   : > { %v1105_v25 = vmul.f32 0.6931472, %v1537_v30  ;;  %v1539_v30 = vpop.eup %1538  ;;  %vm2194_vm2 = vcmp.lt.f32.partialorder %v720_v49, 0.0004427343  ;;  %v719_v11 = vmul.f32 %v1533_v39, %v718_v62  ;;  %v2212_v49 = vsel %vm1193_vm1, %v1951_v44, %v2067_v46 }
 0x218   : > { %v681_v57 = vsel %vm2139_vm10, %v678_v32, %v675_v20  ;;  %v2184_v32 = vadd.f32 %v1999_v23, %v1987_v14  ;;  %v1541_v20 = vpop.eup %1540  ;;  %v684_v48 = vmul.f32 0.6931472, %v1539_v30  ;;  %v2644_v27 = vsub.f32 %v1943_v40, %v1933_v29 }
 0x219   : > { %v691_v60 = vadd.f32 %v681_v57, %v2638_v50  ;;  %v1111_v3 = vsel %vm2143_vm11, %v1108_v54, %v1105_v25  ;;  %v1114_v59 = vmul.f32 0.6931472, %v1541_v20  ;;  %v1140_v54 = vmul.f32 %v1531_v55, %v1139_v21 }
 0x21a   : > { %v1121_v6 = vadd.f32 %v1111_v3, %v2639_v1  ;;  %v2203_v13 = vsel %vm1193_vm1, %v2184_v32, %v2080_v4  ;;  %v1543_v56 = vpop.eup %1542  ;;  %v690_v52 = vsel %vm2150_vm13, %v687_v37, %v684_v48  ;;  %v2645_v4 = vmax.f32 %v2002_v26, 0.0 }
 0x21b   : > { %v693_v58 = vadd.f32 0.001, %v691_v60  ;;  %v1545_v55 = vpop.eup %1544  ;;  %v1120_v15 = vsel %vm2161_vm14, %v1117_v31, %v1114_v59  ;;  %v1144_v37 = vadd.f32 1.0, %v1543_v56  ;;  %v2646_v39 = vsub.f32 %v1949_v43, %v1937_v35 }
 0x21c   : > { %v1123_v23 = vadd.f32 0.001, %v1121_v6  ;;  %v692_v22 = vadd.f32 %v690_v52, %v2645_v4  ;;  %v2647_v21 = vmax.f32 %v2013_v33, 0.0  ;;  %v707_v57 = vmul.f32 0.6931472, %v1545_v55 }
 0x21d   : > { %v816_v45 = vmul.f32 %v2644_v27, %v693_v58  ;;  %v2228_v62 = vadd.f32 %v2006_v28, %v1987_v14  ;;  %1552 = vlog2.f32 %v1144_v37  ;;  %v1147_v30 = vmul.f32 -0.5, %v1543_v56  ;;  %v1547_v47 = vpop.eup %1546 }
 0x21e   : > { %v1241_v25 = vmul.f32 %v2646_v39, %v1123_v23  ;;  %v1122_v46 = vadd.f32 %v1120_v15, %v2647_v21  ;;  %v694_v26 = vadd.f32 0.001, %v692_v22  ;;  %v713_v35 = vsel %vm2165_vm15, %v710_v24, %v707_v57 }
 0x21f   : > { %v818_v29 = vadd.f32 %v816_v45, %v2046_v17  ;;  %v1159_v33 = vand.u32 2147483647, %v2184_v32  ;;  %v1549_v60 = vpop.eup %1548  ;;  %v2648_v3 = vsub.f32 %v1961_v61, %v1947_v42  ;;  %v2649_v20 = vmax.f32 %v2026_v51, 0.0 }
 0x220   : > { %v1243_v31 = vadd.f32 %v1241_v25, %v2073_v2  ;;  %v1124_v50 = vadd.f32 0.001, %v1122_v46  ;;  %v1137_v48 = vmul.f32 0.6931472, %v1547_v47  ;;  %v2244_v58 = vpop.eup %1550  ;;  %v2650_v38 = vsub.f32 %v1967_v63, %v1959_v53  ;;  %v2654_v25 = vld [vmem:[#allocation23_spill] sm:$0xff] }
 0x221   : > { %v817_v28 = vmul.f32 %v2648_v3, %v694_v26  ;;  %v723_v1 = vadd.f32 %v713_v35, %v2649_v20  ;;  %v822_v6 = vsel %vm761_vm6, %v818_v29, %v2046_v17  ;;  %v716_v59 = vmul.f32 0.6931472, %v1549_v60  ;;  %v2658_v47 = vld [vmem:[#allocation11_spill] sm:$0xff] }
 0x222   : > { %v1242_v24 = vmul.f32 %v2650_v38, %v1124_v50  ;;  %v1247_v42 = vsel %vm1191_vm7, %v1243_v31, %v2073_v2  ;;  %v1150_v51 = vand.u32 2147483647, %v1543_v56  ;;  %v1143_v17 = vsel %vm2188_vm0, %v1140_v54, %v1137_v48  ;;  %v2662_v38 = vld [vmem:[#allocation14_spill] sm:$0xff] }
 0x223   : > { %v819_v23 = vadd.f32 %v817_v28, %v2083_v19  ;;  %v725_v52 = vadd.f32 0.001, %v723_v1  ;;  %v1148_v55 = vadd.f32 1.0, %v1147_v30  ;;  %v2651_v53 = vmax.f32 %v2056_v36, 0.0  ;;  %v2661_v1 = vld [vmem:[#allocation20_spill] sm:$0xff] }
 0x224   : > { %v2257_v27 = vadd.f32 %v1242_v24, %v2110_v0  ;;  %v722_v4 = vsel %vm2194_vm2, %v719_v11, %v716_v59  ;;  %v737_v2 = vadd.f32 1.0, %v2244_v58  ;;  %v2652_v22 = vsub.f32 %v1945_v41, %v1943_v40 }
 0x225   : > { %v1153_v45 = vadd.f32 %v1143_v17, %v2651_v53  ;;  %v2653_v37 = vmax.f32 %v2070_v16, 0.0  ;;  %v823_v54 = vsel %vm762_vm8, %v819_v23, %v2083_v19  ;;  %v740_v36 = vmul.f32 -0.5, %v2244_v58 }
 0x226   : > { %v826_v15 = vmul.f32 %v2652_v22, %v725_v52  ;;  %v1126_v12 = vmax.f32 %v2105_v18, 0.0  ;;  %v2280_v40 = vsel %vm1192_vm9, %v2257_v27, %v2110_v0  ;;  %1554 = vlog2.f32 %v737_v2  ;;  %v2664_v52 = vld [vmem:[#allocation15_spill] sm:$0xff]  ;;  %v2343_v2 = vld [vmem:[%s1794_s8] sm:$0xff] }
 0x227   : > { %v724_v5 = vadd.f32 %v722_v4, %v2653_v37  ;;  %v1155_v39 = vadd.f32 0.001, %v1153_v45  ;;  %v727_v21 = vmax.f32 %v2654_v25, 0.0  ;;  %v1161_v46 = vsub.f32 0.0, %v1159_v33  ;;  %v1553_v0 = vpop.eup %1552  ;;  %v2666_v45 = vld [vmem:[#allocation21_spill] sm:$0xff]  ;;  %v2667_v22 = vld [vmem:[#allocation8_spill] sm:$0xff] }
 0x228   : > { %v2282_v16 = vadd.f32 %v826_v15, %v818_v29  ;;  %v2655_v19 = vsub.f32 %v1951_v44, %v1949_v43  ;;  %v1149_v26 = vmul.f32 %v1543_v56, %v1148_v55  ;;  %vm2288_vm3 = vcmp.lt.f32.partialorder %v1150_v51, 0.0004427343  ;;  %v2668_v15 = vld [vmem:[#allocation16_spill] sm:$0xff] }
 0x229   : > { %v726_v11 = vadd.f32 0.001, %v724_v5  ;;  %v730_v30 = vand.u32 2147483647, %v2228_v62  ;;  %v2659_v29 = vsub.f32 %v2658_v47, %v1961_v61  ;;  %v741_v35 = vadd.f32 1.0, %v740_v36  ;;  %v2660_v61 = vld [vmem:[#allocation19_spill] sm:$0xff] }
 0x22a   : > { %v1251_v57 = vmul.f32 %v2655_v19, %v1155_v39  ;;  %v2300_v33 = vsel %vm763_vm12, %v2282_v16, %v822_v6  ;;  %v1163_v43 = vmul.f32 1.442695, %v1161_v46  ;;  %v1146_v60 = vmul.f32 0.6931472, %v1553_v0  ;;  %v2669_v39 = vld [vmem:[#allocation24_spill] sm:$0xff] }
 0x22b   : > { %v827_v50 = vmul.f32 %v2659_v29, %v726_v11  ;;  %v732_v3 = vsub.f32 0.0, %v730_v30  ;;  %vm764_vm4 = vcmp.ge.f32.partialorder %v1800_v7, %v2658_v47  ;;  %v2322_v24 = vadd.f32 %v2662_v38, %v1987_v14 }
 0x22c   : > { %v2302_v56 = vadd.f32 %v1251_v57, %v1243_v31  ;;  %1556 = vpow2.f32 %v1163_v43  ;;  %v772_v20 = vsel %vm764_vm4, %v2228_v62, %v2660_v61  ;;  %v831_v48 = vsel %vm764_vm4, %v2658_v47, %v2661_v1  ;;  %v2367_v57 = vld [vmem:[%s1794_s8 + $0x10] sm:$0xff]  ;;  %v2397_v1 = vld [vmem:[%s1794_s8 + $0x8] sm:$0xff] }
 0x22d   : > { %v2306_v28 = vadd.f32 %v827_v50, %v819_v23  ;;  %v1152_v31 = vsel %vm2288_vm3, %v1149_v26, %v1146_v60  ;;  %v735_v7 = vmul.f32 1.442695, %v732_v3  ;;  %v2663_v23 = vld [vmem:[#allocation13_spill] sm:$0xff]  ;;  %v639_v17 = vadd.f32 %v2664_v52, %v494_v9 }
 0x22e   : > { %v2318_v6 = vsel %vm1193_vm1, %v2302_v56, %v1247_v42  ;;  %v1154_v59 = vadd.f32 %v1152_v31, %v1126_v12  ;;  %vm1194_vm5 = vcmp.ge.f32.partialorder %v1803_v8, %v2663_v23  ;;  %v743_v55 = vand.u32 2147483647, %v2244_v58  ;;  %v2665_v42 = vld [vmem:[#allocation22_spill] sm:$0xff]  ;;  %v2671_v26 = vld [vmem:[#allocation9_spill] sm:$0xff] }
 0x22f   : > { %v2325_v51 = vsel %vm764_vm4, %v2306_v28, %v823_v54  ;;  %1558 = vpow2.f32 %v735_v7  ;;  %v1160_v10 = vand.u32 2147483647, %v2322_v24  ;;  %v1202_v14 = vsel %vm1194_vm5, %v2322_v24, %v2665_v42  ;;  %v2673_v31 = vld [vmem:[#allocation10_spill] sm:$0xff] }
 0x230   : > { %v1156_v53 = vadd.f32 0.001, %v1154_v59  ;;  %v1256_v4 = vsel %vm1194_vm5, %v2663_v23, %v2666_v45  ;;  %vm765_vm6 = vcmp.ge.f32.partialorder %v2343_v2, %v2667_v22  ;;  %v1069_v37 = vadd.f32 %v2668_v15, %v494_v9  ;;  %v1555_v5 = vpop.eup %1554  ;;  %v2425_v45 = vld [vmem:[%s1794_s8 + $0x18] sm:$0xff]  ;;  %v2676_v15 = vld [vmem:[#allocation12_spill] sm:$0xff]  ;;  %s2448_s8 = sand.u32 1, %s1674_s25  }
 0x231   : > { %v742_v54 = vmul.f32 %v2244_v58, %v741_v35  ;;  %v1162_v36 = vsub.f32 0.0, %v1160_v10  ;;  %v2353_v12 = vsel %vm765_vm6, %v639_v17, %v2669_v39  ;;  %v2360_v11 = vsel %vm765_vm6, %v2667_v22, %v2176_v34  ;;  %s1410_s19 = sshll.u32 %s2448_s8, 5  ;;  %s1287_s15 = scalar_lea.sflag [#allocation5], %s2448_s8 }
 0x232   : > { %v2670_v25 = vsub.f32 %v2663_v23, %v1967_v63  ;;  %v739_v19 = vmul.f32 0.6931472, %v1555_v5  ;;  %v777_v58 = vand.u32 2147483647, %v2353_v12  ;;  %vm1195_vm7 = vcmp.ge.f32.partialorder %v2367_v57, %v2671_v26  ;;  %s2474_s20 = scalar_lea.vmem [#allocation4], %s1410_s19  ;;  %s2489_s21 = scalar_lea.vmem [#allocation2], %s1410_s19 }
 0x233   : > { %vm744_vm8 = vcmp.lt.f32.partialorder %v743_v55, 0.0004427343  ;;  %v1165_v18 = vmul.f32 1.442695, %v1162_v36  ;;  %v2375_v34 = vsel %vm1195_vm7, %v1069_v37, %v2203_v13  ;;  %v2382_v63 = vsel %vm1195_vm7, %v2671_v26, %v2212_v49  ;;  %v2672_v49 = vld [vmem:[#allocation17_spill] sm:$0xff]  ;;  %s1315_s23 = sshll.u32 %s2474_s20, 4  ;;  %s2510_s23 = int_to_ptr.vmem [resolvable:$true] %s1315_s23 }
 0x234   : > { %v1252_v46 = vmul.f32 %v2670_v25, %v1156_v53  ;;  %v745_v0 = vsel %vm744_vm8, %v742_v54, %v739_v19  ;;  %v779_v29 = vsub.f32 0.0, %v777_v58  ;;  %v1207_v35 = vand.u32 2147483647, %v2375_v34  ;;  %v2675_v53 = vld [vmem:[#allocation18_spill] sm:$0xff]  ;;  %s1588_s16 = scalar_lea.vmem %s2510_s23, 512  ;;  %s1594_s19 = scalar_lea.vmem %s1593_s18, 1024 }
 0x235   : > { %v755_v50 = vadd.f32 %v745_v0, %v727_v21  ;;  %1560 = vpow2.f32 %v1165_v18  ;;  %v641_v3 = vadd.f32 %v2672_v49, %v494_v9  ;;  %vm766_vm9 = vcmp.ge.f32.partialorder %v2397_v1, %v2673_v31  ;;  %p1589_p11 = scmp.ne.s32.totalorder %s2510_s23, %s1588_s16  ;;  %p1595_p0 = scmp.lt.s32.totalorder %s2510_s23, %s1593_s18 }
 0x236   : > { %v2385_v30 = vadd.f32 %v1252_v46, %v2257_v27  ;;  %v1557_v43 = vpop.eup %1556  ;;  %v781_v60 = vmul.f32 1.442695, %v779_v29  ;;  %v1209_v21 = vsub.f32 0.0, %v1207_v35  ;;  %v2410_v8 = vsel %vm766_vm9, %v2673_v31, %v831_v48  ;;  %p1596_p1 = scmp.lt.s32.totalorder %s1594_s19, %s1588_s16 }
 0x237   : > { %v757_v61 = vadd.f32 0.001, %v755_v50  ;;  %v1167_v27 = vadd.f32 1.0, %v1557_v43  ;;  %v2404_v7 = vsel %vm766_vm9, %v641_v3, %v772_v20  ;;  %v2674_v38 = vsub.f32 %v2667_v22, %v1945_v41  ;;  %p1590_p12 = pnand %p1589_p11, %p1766_p5 }
 0x238   : > { %v2393_v13 = vsel %vm1194_vm5, %v2385_v30, %v2280_v40  ;;  %1562 = vpow2.f32 %v781_v60  ;;  %v1211_v17 = vmul.f32 1.442695, %v1209_v21  ;;  %v778_v10 = vand.u32 2147483647, %v2404_v7  ;;  %p1597_p2 = por %p1596_p1, %p1595_p0 }
 0x239   : > { %v1559_v40 = vpop.eup %1558  ;;  %v836_v59 = vmul.f32 %v2674_v38, %v757_v61  ;;  %1564 = vlog2.f32 %v1167_v27  ;;  %v1170_v20 = vmul.f32 -0.5, %v1557_v43  ;;  %v1071_v41 = vadd.f32 %v2675_v53, %v494_v9  ;;  %p1591_p13 = pneg %p1590_p12 }
 0x23a   : > { %v746_v52 = vadd.f32 1.0, %v1559_v40  ;;  %v780_v42 = vsub.f32 0.0, %v778_v10  ;;  %vm1196_vm10 = vcmp.ge.f32.partialorder %v2425_v45, %v2676_v15  ;;  %v749_v37 = vmul.f32 -0.5, %v1559_v40 }
 0x23b   : > { %v838_v55 = vadd.f32 %v836_v59, %v2282_v16  ;;  %v2432_v54 = vsel %vm1196_vm10, %v1071_v41, %v1202_v14  ;;  %v1171_v9 = vadd.f32 1.0, %v1170_v20  ;;  %v1173_v36 = vand.u32 2147483647, %v1557_v43  ;;  %p1598_p3 = pnand %p1597_p2, %p1591_p13 }
 0x23c   : > { %1566 = vlog2.f32 %v746_v52  ;;  %v783_v5 = vmul.f32 1.442695, %v780_v42  ;;  %v1208_v39 = vand.u32 2147483647, %v2432_v54  ;;  %v750_v19 = vadd.f32 1.0, %v749_v37 }
 0x23d   : > { %v2421_v48 = vsel %vm765_vm6, %v838_v55, %v2300_v33  ;;  %1568 = vpow2.f32 %v1211_v17  ;;  %v2438_v33 = vsel %vm1196_vm10, %v2676_v15, %v1256_v4  ;;  %v1157_v14 = vmax.f32 %v2184_v32, 0.0 }
 0x23e   : > { %1570 = vpow2.f32 %v783_v5  ;;  %v1210_v18 = vsub.f32 0.0, %v1208_v39  ;;  %v1172_v29 = vmul.f32 %v1557_v43, %v1171_v9  ;;  %v752_v50 = vand.u32 2147483647, %v1559_v40 }
 0x23f   : > { %v1561_v16 = vpop.eup %1560  ;;  %vm1174_vm11 = vcmp.lt.f32.partialorder %v1173_v36, 0.0004427343  ;;  %v751_v21 = vmul.f32 %v1559_v40, %v750_v19  ;;  %v728_v38 = vmax.f32 %v2228_v62, 0.0  ;;  %v2677_v42 = vsub.f32 %v2671_v26, %v1951_v44 }
 0x240   : > { %v1176_v22 = vadd.f32 1.0, %v1561_v16  ;;  %v1179_v4 = vmul.f32 -0.5, %v1561_v16  ;;  %v1213_v35 = vmul.f32 1.442695, %v1210_v18  ;;  %vm753_vm12 = vcmp.lt.f32.partialorder %v752_v50, 0.0004427343 }
 0x241   : > { %v1182_v10 = vand.u32 2147483647, %v1561_v16  ;;  %v1158_v44 = vmax.f32 %v2322_v24, 0.0 }
 0x242   : > { %v1563_v25 = vpop.eup %1562  ;;  %1572 = vlog2.f32 %v1176_v22  ;;  %v1180_v17 = vadd.f32 1.0, %v1179_v4 }
 0x243   : > { %v1565_v46 = vpop.eup %1564  ;;  %v785_v58 = vadd.f32 1.0, %v1563_v25  ;;  %v788_v59 = vmul.f32 -0.5, %v1563_v25  ;;  %v791_v5 = vand.u32 2147483647, %v1563_v25  ;;  %vm1183_vm13 = vcmp.lt.f32.partialorder %v1182_v10, 0.0004427343 }
 0x244   : > { %v1169_v0 = vmul.f32 0.6931472, %v1565_v46  ;;  %v1181_v36 = vmul.f32 %v1561_v16, %v1180_v17  ;;  %v2678_v46 = vsub.f32 %v2673_v31, %v2658_v47 }
 0x245   : > { %1574 = vlog2.f32 %v785_v58  ;;  %v789_v37 = vadd.f32 1.0, %v788_v59  ;;  %vm792_vm14 = vcmp.lt.f32.partialorder %v791_v5, 0.0004427343 }
 0x246   : > { %v1567_v60 = vpop.eup %1566  ;;  %v1175_v49 = vsel %vm1174_vm11, %v1172_v29, %v1169_v0  ;;  %1576 = vpow2.f32 %v1213_v35 }
 0x247   : > { %v1569_v3 = vpop.eup %1568  ;;  %v1185_v61 = vadd.f32 %v1175_v49, %v1157_v14  ;;  %v748_v27 = vmul.f32 0.6931472, %v1567_v60  ;;  %v775_v14 = vmax.f32 %v2353_v12, 0.0  ;;  %v790_v47 = vmul.f32 %v1563_v25, %v789_v37 }
 0x248   : > { %v1215_v52 = vadd.f32 1.0, %v1569_v3  ;;  %v1571_v20 = vpop.eup %1570  ;;  %v1218_v39 = vmul.f32 -0.5, %v1569_v3  ;;  %v1221_v4 = vand.u32 2147483647, %v1569_v3 }
 0x249   : > { %v1187_v32 = vadd.f32 0.001, %v1185_v61  ;;  %v754_v43 = vsel %vm753_vm12, %v751_v21, %v748_v27  ;;  %v794_v62 = vadd.f32 1.0, %v1571_v20  ;;  %v797_v35 = vmul.f32 -0.5, %v1571_v20 }
 0x24a   : > { %v756_v55 = vadd.f32 %v754_v43, %v728_v38  ;;  %1578 = vlog2.f32 %v1215_v52  ;;  %v1219_v24 = vadd.f32 1.0, %v1218_v39  ;;  %v2679_v61 = vsub.f32 %v2676_v15, %v2663_v23 }
 0x24b   : > { %v1261_v53 = vmul.f32 %v2677_v42, %v1187_v32  ;;  %1580 = vlog2.f32 %v794_v62  ;;  %v844_v27 = vsub.f32 %v2343_v2, %v2360_v11  ;;  %v798_v52 = vadd.f32 1.0, %v797_v35 }
 0x24c   : > { %v1573_v41 = vpop.eup %1572  ;;  %v758_v40 = vadd.f32 0.001, %v756_v55  ;;  %v1220_v59 = vmul.f32 %v1569_v3, %v1219_v24  ;;  %vm1222_vm15 = vcmp.lt.f32.partialorder %v1221_v4, 0.0004427343  ;;  %v800_v31 = vand.u32 2147483647, %v1571_v20 }
 0x24d   : > { %v1263_v9 = vadd.f32 %v1261_v53, %v2302_v56  ;;  %v1178_v22 = vmul.f32 0.6931472, %v1573_v41  ;;  %v799_v55 = vmul.f32 %v1571_v20, %v798_v52  ;;  %v1269_v42 = vsub.f32 %v2367_v57, %v2382_v63 }
 0x24e   : > { %v837_v19 = vmul.f32 %v2678_v46, %v758_v40  ;;  %v776_v53 = vmax.f32 %v2404_v7, 0.0  ;;  %vm801_vm0 = vcmp.lt.f32.partialorder %v800_v31, 0.0004427343  ;;  %v845_v7 = vsub.f32 %v2397_v1, %v2410_v8 }
 0x24f   : > { %v1575_v58 = vpop.eup %1574  ;;  %v1184_v18 = vsel %vm1183_vm13, %v1181_v36, %v1178_v22  ;;  %v1267_v56 = vsel %vm1195_vm7, %v1263_v9, %v2318_v6  ;;  %v1206_v9 = vmax.f32 %v2432_v54, 0.0  ;;  %v1270_v1 = vsub.f32 %v2425_v45, %v2438_v33 }
 0x250   : > { %v839_v16 = vadd.f32 %v837_v19, %v2306_v28  ;;  %v1186_v0 = vadd.f32 %v1184_v18, %v1158_v44  ;;  %v787_v29 = vmul.f32 0.6931472, %v1575_v58  ;;  %v1577_v50 = vpop.eup %1576 }
 0x251   : > { %v1224_v6 = vadd.f32 1.0, %v1577_v50  ;;  %v1227_v2 = vmul.f32 -0.5, %v1577_v50  ;;  %v1230_v15 = vand.u32 2147483647, %v1577_v50 }
 0x252   : > { %v1188_v60 = vadd.f32 0.001, %v1186_v0  ;;  %v793_v49 = vsel %vm792_vm14, %v790_v47, %v787_v29  ;;  %v843_v12 = vsel %vm766_vm9, %v839_v16, %v2325_v51  ;;  %v1205_v51 = vmax.f32 %v2375_v34, 0.0 }
 0x253   : > { %v803_v26 = vadd.f32 %v793_v49, %v775_v14  ;;  %1582 = vlog2.f32 %v1224_v6  ;;  %v1228_v40 = vadd.f32 1.0, %v1227_v2  ;;  %vm1231_vm1 = vcmp.lt.f32.partialorder %v1230_v15, 0.0004427343 }
 0x254   : > { %v1579_v28 = vpop.eup %1578  ;;  %v1262_v25 = vmul.f32 %v2679_v61, %v1188_v60 }
 0x255   : > { %v805_v21 = vadd.f32 0.001, %v803_v26  ;;  %v1217_v38 = vmul.f32 0.6931472, %v1579_v28  ;;  %v1581_v11 = vpop.eup %1580  ;;  %v1229_v5 = vmul.f32 %v1577_v50, %v1228_v40 }
 0x256   : > { %v1264_v32 = vadd.f32 %v1262_v25, %v2385_v30  ;;  %v796_v3 = vmul.f32 0.6931472, %v1581_v11 }
 0x257   : > { %v846_v43 = vmul.f32 %v844_v27, %v805_v21  ;;  %852 = vst [vmem:[%s2474_s20] sm:$0xff] %v805_v21  ;;  %v1223_v23 = vsel %vm1222_vm15, %v1220_v59, %v1217_v38 }
 0x258   : > { %v1233_v17 = vadd.f32 %v1223_v23, %v1205_v51  ;;  %v2481_v30 = vsel %vm1196_vm10, %v1264_v32, %v2393_v13  ;;  %v802_v41 = vsel %vm801_vm0, %v799_v55, %v796_v3 }
 0x259   : > { %v848_v34 = vadd.f32 %v846_v43, %v2421_v48  ;;  %v804_v48 = vadd.f32 %v802_v41, %v776_v53 }
 0x25a   : > { %v1235_v10 = vadd.f32 0.001, %v1233_v17 }
 0x25b   : > { %850 = vst [vmem:[%s2489_s21] sm:$0xff] %v848_v34  ;;  %v806_v63 = vadd.f32 0.001, %v804_v48 }
 0x25c   : > { %v1271_v13 = vmul.f32 %v1269_v42, %v1235_v10  ;;  %1444 = vst [vmem:[%s2474_s20 + $0x10] sm:$0xff] %v1235_v10 }
 0x25d   : > { %v1583_v20 = vpop.eup %1582  ;;  %v847_v62 = vmul.f32 %v845_v7, %v806_v63  ;;  %853 = vst [vmem:[%s2474_s20 + $0x8] sm:$0xff] %v806_v63 }
 0x25e   : > { %v1273_v57 = vadd.f32 %v1271_v13, %v1267_v56  ;;  %v1226_v37 = vmul.f32 0.6931472, %v1583_v20 }
 0x25f   : > { %v849_v36 = vadd.f32 %v847_v62, %v843_v12 }
 0x260   : > { %1442 = vst [vmem:[%s2489_s21 + $0x10] sm:$0xff] %v1273_v57  ;;  %v1232_v22 = vsel %vm1231_vm1, %v1229_v5, %v1226_v37 }
 0x261   : > { %v1234_v39 = vadd.f32 %v1232_v22, %v1206_v9  ;;  %851 = vst [vmem:[%s2489_s21 + $0x8] sm:$0xff] %v849_v36 }
 0x263   : > { %v1236_v46 = vadd.f32 0.001, %v1234_v39 }
 0x265   : > { %v1272_v8 = vmul.f32 %v1270_v1, %v1236_v46  ;;  %1445 = vst [vmem:[%s2474_s20 + $0x18] sm:$0xff] %v1236_v46 }
 0x266   : > { %1601 = shalt.err (!%p1598_p3)
}
 0x267   : > { %s1602_s20 = scalar_lea.hbm %s2508_s14, 512  ;;  %s1606_s17 = scalar_lea.hbm %s2595_s7, 1024 }
 0x268   : > { %p1603_p4 = scmp.ne.s32.totalorder %s2508_s14, %s1602_s20  ;;  %p1607_p9 = scmp.lt.u32.totalorder %s2508_s14, %s2595_s7 }
 0x269   : > { %p1608_p10 = scmp.lt.u32.totalorder %s1606_s17, %s1602_s20  ;;  %p1610_p12 = scmp.lt.u32.totalorder %s1602_s20, %s2508_s14 }
 0x26a   : > { %p1604_p7 = pnand %p1603_p4, %p1766_p5 }
 0x26b   : > { %p1609_p11 = por %p1608_p10, %p1607_p9 }
 0x26c   : > { %p1605_p8 = pneg %p1604_p7 }
 0x26d   : > { %p1611_p13 = por %p1610_p12, %p1609_p11 }
 0x26f   : > { %p1612_p0 = pnand %p1611_p13, %p1605_p8 }
 0x271   : > { %1615 = shalt.err (!%p1612_p0)
}
 0x272   : > { %1473 = dma.vmem_to_hbm [thread:$0]  (%p1766_p5), %s2510_s23, 512, %s2508_s14, %s1287_s15   ;;  %v1274_v45 = vadd.f32 %v1272_v8, %v2481_v30 }
 0x273   : > { %s2542_s19 = scalar_lea.hbm %s2594_s6, %s1454_s22  ;;  %s2680_s20 = sshll.u32 %s2489_s21, 4  ;;  %s2546_s20 = int_to_ptr.vmem [resolvable:$true] %s2680_s20 }
 0x274   : > { %1443 = vst [vmem:[%s2489_s21 + $0x18] sm:$0xff] %v1274_v45  ;;  %s1282_s29 = scalar_lea.sflag [#allocation3], %s2448_s8  ;;  %s1616_s9 = scalar_lea.vmem %s2546_s20, 512 }
 0x275   : > { %p1617_p1 = scmp.ne.s32.totalorder %s2546_s20, %s1616_s9  ;;  %s1687_s23 = smov [#allocation2]  }
 0x276   : > { %s1620_s28 = sshll.u32 %s1687_s23, 4  ;;  %s1621_s28 = int_to_ptr.vmem [resolvable:$false] %s1620_s28 }
 0x277   : > { %p1618_p2 = pnand %p1617_p1, %p1766_p5  ;;  %s1622_s14 = scalar_lea.vmem %s1621_s28, 1024 }
 0x278   : > { %p1623_p4 = scmp.lt.s32.totalorder %s2546_s20, %s1621_s28  ;;  %p1624_p7 = scmp.lt.s32.totalorder %s1622_s14, %s1616_s9 }
 0x279   : > { %p1619_p3 = pneg %p1618_p2 }
 0x27a   : > { %p1625_p8 = por %p1624_p7, %p1623_p4 }
 0x27c   : > { %p1626_p9 = pnand %p1625_p8, %p1619_p3 }
 0x27e   : > { %1629 = shalt.err (!%p1626_p9)
}
 0x27f   : > { %s1630_s8 = scalar_lea.hbm %s2542_s19, 512  ;;  %s1634_s15 = scalar_lea.hbm %s2594_s6, 1024 }
 0x280   : > { %p1631_p10 = scmp.ne.s32.totalorder %s2542_s19, %s1630_s8  ;;  %p1635_p13 = scmp.lt.u32.totalorder %s2542_s19, %s2594_s6 }
 0x281   : > { %p1636_p0 = scmp.lt.u32.totalorder %s1634_s15, %s1630_s8  ;;  %p1638_p2 = scmp.lt.u32.totalorder %s1630_s8, %s2542_s19 }
 0x282   : > { %p1632_p11 = pnand %p1631_p10, %p1766_p5 }
 0x283   : > { %p1637_p1 = por %p1636_p0, %p1635_p13 }
 0x284   : > { %p1633_p12 = pneg %p1632_p11 }
 0x285   : > { %p1639_p3 = por %p1638_p2, %p1637_p1 }
 0x287   : > { %p1640_p4 = pnand %p1639_p3, %p1633_p12 }
 0x289   : > { %1643 = shalt.err (!%p1640_p4)
}
 0x28a   : > { %1472 = dma.vmem_to_hbm [thread:$0]  (%p1766_p5), %s2546_s20, 512, %s2542_s19, %s1282_s29  }
 0x28b PF: > { %p1483_p7 = scmp.ge.s32.totalorder %s1682_s27, 2  ;;  %s1327_s13 = sand.u32 1, %s1670_s24  }
 0x28c   : > { %s1328_s16 = scalar_lea.sflag [#allocation3], %s1327_s13 }
 0x28d   : > { %p1477_p8 = pnand %p1483_p7, %p1770_p6 }
 0x28f   : > { %1661 = dma.done.wait (!%p1477_p8), %s1328_s16, 512  }
 0x290   : > { %1663 = vsyncadd (!%p1477_p8), %s1328_s16, 4294966784  ;;  %s1337_s9 = scalar_lea.sflag [#allocation5], %s1327_s13 }
 0x291   : > { %1665 = dma.done.wait (!%p1477_p8), %s1337_s9, 512  }
 0x292   : > { %1667 = vsyncadd (!%p1477_p8), %s1337_s9, 4294966784  ;;  %p21_p5 = scmp.ge.s32.totalorder %s1753_s30, 4   ;;  %s2681_s24 = smov %s1674_s25 }
 0x293   : > { %s2682_s25 = smov %s1678_s26  ;;  %s2683_s26 = smov %s1764_s10 }
 0x294   : > { %s2684_s27 = smov %s1753_s30  ;;  %23 = sbr.rel (!%p21_p5) target bundleno = 5 (0x5), region = 99 }
 0x29b   :  { %1342 = vsyncpa [#allocation3], 1 }
 0x29c   :  { %1344 = vsyncpa [#allocation3 + $0x1], 1 }
 0x29d   :  { %1345 = vsyncpa [#allocation5], 1 }
 0x29e   :  { %1347 = vsyncpa [#allocation5 + $0x1], 1 }

</bundles_post_ra>
